<compile_context>
chip_gen: v7x
topology: tpu7x:2x2x1
jax: 0.10.0
libtpu: 0.0.40
codegen_flags: <defaults>
</compile_context>

<pallas_src>
import functools

import jax
import jax.numpy as jnp
from jax import lax
from jax.experimental import pallas as pl
from jax.experimental.pallas import tpu as pltpu

BN_EPS = 1e-5
LANE = 128

# MXU input dtype for the two conv matmuls.  f32 keeps the forward numerics of
# the PyTorch module (f32 convs).  On v6e/v7x this can be flipped to
# jnp.bfloat16 for the bf16-native MXU rate (f32 accumulation is kept via
# preferred_element_type; all BN / affine / ReLU math stays in f32 either way).
DOT_DTYPE = jnp.float32


def _down_fused_kernel(x_ref, w1_ref, w2_ref, bn1_ref, bn2_ref, mask_ref,
                       o_ref, col_ref, h1_ref, *,
                       c1, wp, mv, lo, lpad, hlen, inv_m1, inv_m2):
    """Fused Down.forward on the flat padded grid.

    x_ref:    (c1, mp)      flat padded input, channel-major, lane-dense
    w1_ref:   (c1, 9*c1)    conv1 weights, K ordered (tap, cin), tap = dy*3+dx
    w2_ref:   (c2, 9*c1)    conv2 weights, same K ordering
    bn1_ref:  (c1, 2)       col 0 = gamma1, col 1 = beta1
    bn2_ref:  (c2, 2)       col 0 = gamma2, col 1 = beta2
    mask_ref: (2, mv)       row 0 = interior mask, row 1 = stride-2 sample mask
    o_ref:    (c2, mv)      dense stage-2 output (wrapper extracts sample grid)
    col_ref:  (9*c1, mv)    shared im2col staging (reused by both stages)
    h1_ref:   (c1, hlen)    padded stage-1 output, left margin lpad for alignment
    """
    # ---------------- stage 1: Conv3x3 stride 1 ----------------
    # im2col: 9 shifted contiguous lane-slices of the flat padded input stacked
    # along K -> one MXU matmul with K = 9*c1.  Destination rows start at lane
    # offset 0 (aligned stores); the shifts live on the load path.
    for dy in range(3):
        for dx in range(3):
            t = dy * 3 + dx
            off = dy * wp + dx
            col_ref[t * c1:(t + 1) * c1, :] = x_ref[:, off:off + mv]

    acc1 = jnp.dot(w1_ref[...].astype(DOT_DTYPE),
                   col_ref[...].astype(DOT_DTYPE),
                   preferred_element_type=jnp.float32)          # (c1, mv)

    valid = mask_ref[0:1, :]   # 1.0 on the n*h*w interior (true conv) positions
    samp = mask_ref[1:2, :]    # 1.0 on the stride-2 sample positions

    # BN1 (train mode: batch stats, biased variance).  Centered two-pass variance
    # avoids E[x^2]-E[x]^2 cancellation.  Conv bias omitted: the batch-mean
    # subtraction cancels a per-channel constant exactly.
    mean1 = jnp.sum(acc1 * valid, axis=1, keepdims=True) * inv_m1   # (c1, 1)
    d1 = (acc1 - mean1) * valid
    var1 = jnp.sum(d1 * d1, axis=1, keepdims=True) * inv_m1
    scale1 = bn1_ref[:, 0:1] * lax.rsqrt(var1 + BN_EPS)
    shift1 = bn1_ref[:, 1:2] - mean1 * scale1
    # Trailing *valid zeroes the non-interior columns, which doubles as conv2's
    # zero padding.
    h1 = jnp.maximum(acc1 * scale1 + shift1, 0.0) * valid           # (c1, mv)

    # -------- stage-1 output back onto the padded flat grid (VMEM only) --------
    # h1 occupies [lpad+lo, lpad+lo+mv); everything the stage-2 windows can touch
    # around it must be zero.  All three stores start at 128-aligned lane offsets
    # (store slot is the binding slot); at most one vreg-row of columns is
    # written twice.
    zstart = ((lpad + lo + mv) // LANE) * LANE
    h1_ref[:, 0:lpad + lo] = jnp.zeros((c1, lpad + lo), jnp.float32)
    h1_ref[:, zstart:hlen] = jnp.zeros((c1, hlen - zstart), jnp.float32)
    h1_ref[:, lpad + lo:lpad + lo + mv] = h1

    # ---------------- stage 2: Conv3x3 stride 2 ----------------
    # Computed densely on the stride-1 grid: at these channel counts the extra
    # taps ride on an otherwise idle MXU and avoid lane-stride-2 reads (not
    # guaranteed to lower).  BN2 statistics are restricted to the stride-2 grid
    # via `samp`; the wrapper extracts the sample columns.
    for dy in range(3):
        for dx in range(3):
            t = dy * 3 + dx
            off = lpad + dy * wp + dx
            col_ref[t * c1:(t + 1) * c1, :] = h1_ref[:, off:off + mv]

    acc2 = jnp.dot(w2_ref[...].astype(DOT_DTYPE),
                   col_ref[...].astype(DOT_DTYPE),
                   preferred_element_type=jnp.float32)          # (c2, mv)

    mean2 = jnp.sum(acc2 * samp, axis=1, keepdims=True) * inv_m2
    d2 = (acc2 - mean2) * samp
    var2 = jnp.sum(d2 * d2, axis=1, keepdims=True) * inv_m2
    scale2 = bn2_ref[:, 0:1] * lax.rsqrt(var2 + BN_EPS)
    shift2 = bn2_ref[:, 1:2] - mean2 * scale2
    o_ref[...] = jnp.maximum(acc2 * scale2 + shift2, 0.0)


def down_forward(x_nchw, params):
    """Full Down.forward (train-mode BN). Input/output in NCHW."""
    n, cin, h, w = x_nchw.shape
    c1, c2 = params["w1"].shape[0], params["w2"].shape[0]
    assert c1 == cin, "conv1 is Conv2d(in, in): stage-1 channels must equal cin"

    hp, wp = h + 2, w + 2
    mp = n * hp * wp               # flat padded grid size
    lo = wp + 1                    # flat offset of the first interior position
    mv = mp - 2 * lo               # computed columns (covers every interior pos)
    ho, wo = (h + 1) // 2, (w + 1) // 2
    m1, m2 = n * h * w, n * ho * wo
    lpad = (-lo) % LANE            # left margin so the in-kernel h1 store aligns
    hlen = lpad + mp

    # NCHW -> (C, N*(H+2)*(W+2)): channel-major, lane-dense flat padded spatial.
    x = jnp.transpose(x_nchw.astype(jnp.float32), (1, 0, 2, 3))
    xflat = jnp.pad(x, ((0, 0), (0, 0), (1, 1), (1, 1))).reshape(cin, mp)

    # Conv weights OIHW -> (Cout, 9*Cin), K ordered (tap, cin) to match im2col.
    w1f = jnp.transpose(params["w1"], (0, 2, 3, 1)).reshape(c1, 9 * cin)
    w2f = jnp.transpose(params["w2"], (0, 2, 3, 1)).reshape(c2, 9 * c1)
    w1f = w1f.astype(jnp.float32)
    w2f = w2f.astype(jnp.float32)

    # BN affine params, (C, 2): col 0 = gamma, col 1 = beta.
    bn1 = jnp.stack([params["g1"], params["be1"]], axis=1).astype(jnp.float32)
    bn2 = jnp.stack([params["g2"], params["be2"]], axis=1).astype(jnp.float32)

    # Lane-dense (2, mv) masks over the flat acc grid (a few KB, DMA'd once):
    #   row 0: interior positions (BN1 stats + conv2 zero padding)
    #   row 1: stride-2 sample positions (BN2 stats)
    yy, xx = jnp.arange(hp), jnp.arange(wp)
    inner_y = (yy >= 1) & (yy <= h)
    inner_x = (xx >= 1) & (xx <= w)
    valid2d = inner_y[:, None] & inner_x[None, :]
    samp2d = valid2d & ((yy % 2) == 1)[:, None] & ((xx % 2) == 1)[None, :]

    def _flat(m2d):
        return jnp.broadcast_to(m2d[None], (n, hp, wp)).reshape(mp)[lo:lo + mv]

    masks = jnp.stack([_flat(valid2d), _flat(samp2d)]).astype(jnp.float32)

    kernel = functools.partial(
        _down_fused_kernel, c1=c1, wp=wp, mv=mv, lo=lo, lpad=lpad, hlen=hlen,
        inv_m1=1.0 / m1, inv_m2=1.0 / m2)

    out = pl.pallas_call(
        kernel,
        out_shape=jax.ShapeDtypeStruct((c2, mv), jnp.float32),
        grid=(1,),
        in_specs=[
            pl.BlockSpec((cin, mp), lambda i: (0, 0)),
            pl.BlockSpec((c1, 9 * cin), lambda i: (0, 0)),
            pl.BlockSpec((c2, 9 * c1), lambda i: (0, 0)),
            pl.BlockSpec((c1, 2), lambda i: (0, 0)),
            pl.BlockSpec((c2, 2), lambda i: (0, 0)),
            pl.BlockSpec((2, mv), lambda i: (0, 0)),
        ],
        out_specs=pl.BlockSpec((c2, mv), lambda i: (0, 0)),
        scratch_shapes=[
            pltpu.VMEM((9 * c1, mv), jnp.float32),   # shared im2col staging
            pltpu.VMEM((c1, hlen), jnp.float32),     # padded stage-1 output
        ],
        compiler_params=pltpu.CompilerParams(
            dimension_semantics=("arbitrary",),
            vmem_limit_bytes=32 * 1024 * 1024),
    )(xflat, w1f, w2f, bn1, bn2, masks)

    # Extract the stride-2 sample grid and return NCHW.  Kept in the wrapper:
    # compacting the sample columns in-kernel needs lane-stride-2 stores, which
    # Mosaic does not guarantee to lower; the extra dense write is ~10 KB here.
    dense = jnp.pad(out, ((0, 0), (lo, lo))).reshape(c2, n, hp, wp)
    y = dense[:, :, 1:h + 1:2, 1:w + 1:2]
    return jnp.transpose(y, (1, 0, 2, 3))


def init_params(key, in_channels, out_channels):
    k1, k2, k3, k4 = jax.random.split(key, 4)
    fan = in_channels * 9
    bound = 1.0 / jnp.sqrt(fan)
    return {
        # Conv weights in PyTorch OIHW layout.
        "w1": jax.random.uniform(k1, (in_channels, in_channels, 3, 3),
                                 jnp.float32, -bound, bound),
        # Conv biases exist in the PyTorch module but are mathematically inert
        # under training-mode BN (batch-mean subtraction cancels them); they are
        # used by the pure-JAX reference below to verify the cancellation.
        "b1": jax.random.uniform(k2, (in_channels,), jnp.float32, -bound, bound),
        "g1": 1.0 + 0.1 * jnp.arange(in_channels, dtype=jnp.float32),
        "be1": 0.05 * jnp.arange(in_channels, dtype=jnp.float32),
        "w2": jax.random.uniform(k3, (out_channels, in_channels, 3, 3),
                                 jnp.float32, -bound, bound),
        "b2": jax.random.uniform(k4, (out_channels,), jnp.float32, -bound, bound),
        "g2": 1.0 + 0.1 * jnp.arange(out_channels, dtype=jnp.float32),
        "be2": 0.05 * jnp.arange(out_channels, dtype=jnp.float32),
    }


def _bn_relu_train(y, gamma, beta):
    mean = jnp.mean(y, axis=(0, 2, 3), keepdims=True)
    var = jnp.mean(jnp.square(y - mean), axis=(0, 2, 3), keepdims=True)
    yn = (y - mean) * lax.rsqrt(var + BN_EPS)
    return jnp.maximum(yn * gamma[None, :, None, None]
                       + beta[None, :, None, None], 0.0)


def _reference_down(x, params):
    """Pure-JAX reference: Conv+bias -> BN(train) -> ReLU, twice."""
    dn = ("NCHW", "OIHW", "NCHW")
    y = lax.conv_general_dilated(x, params["w1"], (1, 1), [(1, 1), (1, 1)],
                                 dimension_numbers=dn,
                                 precision=lax.Precision.HIGHEST)
    y = y + params["b1"][None, :, None, None]
    y = _bn_relu_train(y, params["g1"], params["be1"])
    y = lax.conv_general_dilated(y, params["w2"], (2, 2), [(1, 1), (1, 1)],
                                 dimension_numbers=dn,
                                 precision=lax.Precision.HIGHEST)
    y = y + params["b2"][None, :, None, None]
    return _bn_relu_train(y, params["g2"], params["be2"])


if __name__ == "__main__":
    key = jax.random.PRNGKey(0)
    k_x, k_p, k_x2 = jax.random.split(key, 3)

    N, C_IN, H, W = 2, 4, 16, 16
    C_OUT = 4  # must equal C_IN for BatchNorm2d(out_channels) after conv1 to be valid

    x = jax.random.normal(k_x, (N, C_IN, H, W), dtype=jnp.float32)
    params = init_params(k_p, C_IN, C_OUT)

    fwd = jax.jit(down_forward)
    y = jax.block_until_ready(fwd(x, params))

    assert y.shape == (N, C_OUT, H // 2, W // 2), y.shape
    assert bool(jnp.all(jnp.isfinite(y)))
    assert bool(jnp.all(y >= 0.0))  # ReLU output

    y_ref = _reference_down(x, params)
    err = float(jnp.max(jnp.abs(y - y_ref)))
    assert err < 2e-3, f"mismatch vs reference: max abs err {err}"

    # Odd spatial sizes exercise the ceil-mode output grid and the masked BN2
    # statistics (correctness concern raised in review).
    x_odd = jax.random.normal(k_x2, (N, C_IN, 15, 13), dtype=jnp.float32)
    y_odd = jax.block_until_ready(jax.jit(down_forward)(x_odd, params))
    y_odd_ref = _reference_down(x_odd, params)
    assert y_odd.shape == y_odd_ref.shape == (N, C_OUT, 8, 7), y_odd.shape
    err_odd = float(jnp.max(jnp.abs(y_odd - y_odd_ref)))
    assert err_odd < 2e-3, f"odd-size mismatch vs reference: max abs err {err_odd}"

    print("KERNEL_OK")
</pallas_src>

<mosaic_0001>
module attributes {stable_mosaic.version = 11 : i64} {
  func.func @_down_fused_kernel(%arg0: i32, %arg1: memref<4x648xf32, #tpu.memory_space<vmem>>, %arg2: memref<4x36xf32, #tpu.memory_space<vmem>>, %arg3: memref<4x36xf32, #tpu.memory_space<vmem>>, %arg4: memref<4x2xf32, #tpu.memory_space<vmem>>, %arg5: memref<4x2xf32, #tpu.memory_space<vmem>>, %arg6: memref<2x610xf32, #tpu.memory_space<vmem>>, %arg7: memref<4x610xf32, #tpu.memory_space<vmem>>, %arg8: memref<36x610xf32, #tpu.memory_space<vmem>>, %arg9: memref<4x757xf32, #tpu.memory_space<vmem>>) attributes {dimension_semantics = [#tpu.dimension_semantics<arbitrary>], iteration_bounds = array<i64: 1>, scalar_prefetch = 0 : i64, scratch_operands = 2 : i64, tpu.core_type = #tpu.core_type<tc>, window_params = [{pipeline_mode = #tpu.pipeline_mode<synchronous>, transform_indices = @transform_0, window_bounds = array<i64: 4, 648>}, {pipeline_mode = #tpu.pipeline_mode<synchronous>, transform_indices = @transform_1, window_bounds = array<i64: 4, 36>}, {pipeline_mode = #tpu.pipeline_mode<synchronous>, transform_indices = @transform_2, window_bounds = array<i64: 4, 36>}, {pipeline_mode = #tpu.pipeline_mode<synchronous>, transform_indices = @transform_3, window_bounds = array<i64: 4, 2>}, {pipeline_mode = #tpu.pipeline_mode<synchronous>, transform_indices = @transform_4, window_bounds = array<i64: 4, 2>}, {pipeline_mode = #tpu.pipeline_mode<synchronous>, transform_indices = @transform_5, window_bounds = array<i64: 2, 610>}, {pipeline_mode = #tpu.pipeline_mode<synchronous>, transform_indices = @transform_6, window_bounds = array<i64: 4, 610>}]} {
    %c0 = arith.constant 0 : index
    %c0_0 = arith.constant 0 : index
    %0 = vector.load %arg1[%c0, %c0_0] : memref<4x648xf32, #tpu.memory_space<vmem>>, vector<4x610xf32>
    %c0_1 = arith.constant 0 : index
    %c0_2 = arith.constant 0 : index
    %1 = vector.load %arg8[%c0_1, %c0_2] : memref<36x610xf32, #tpu.memory_space<vmem>>, vector<4x610xf32>
    tpu.vector_store %arg8[%c0_1, %c0_2], %0 {strides = array<i32>} : memref<36x610xf32, #tpu.memory_space<vmem>>, vector<4x610xf32>,
    %c0_3 = arith.constant 0 : index
    %c1 = arith.constant 1 : index
    %2 = vector.load %arg1[%c0_3, %c1] : memref<4x648xf32, #tpu.memory_space<vmem>>, vector<4x610xf32>
    %c4 = arith.constant 4 : index
    %c0_4 = arith.constant 0 : index
    %3 = vector.load %arg8[%c4, %c0_4] : memref<36x610xf32, #tpu.memory_space<vmem>>, vector<4x610xf32>
    tpu.vector_store %arg8[%c4, %c0_4], %2 {strides = array<i32>} : memref<36x610xf32, #tpu.memory_space<vmem>>, vector<4x610xf32>,
    %c0_5 = arith.constant 0 : index
    %c2 = arith.constant 2 : index
    %4 = vector.load %arg1[%c0_5, %c2] : memref<4x648xf32, #tpu.memory_space<vmem>>, vector<4x610xf32>
    %c8 = arith.constant 8 : index
    %c0_6 = arith.constant 0 : index
    %5 = vector.load %arg8[%c8, %c0_6] : memref<36x610xf32, #tpu.memory_space<vmem>>, vector<4x610xf32>
    tpu.vector_store %arg8[%c8, %c0_6], %4 {strides = array<i32>} : memref<36x610xf32, #tpu.memory_space<vmem>>, vector<4x610xf32>,
    %c0_7 = arith.constant 0 : index
    %c18 = arith.constant 18 : index
    %6 = vector.load %arg1[%c0_7, %c18] : memref<4x648xf32, #tpu.memory_space<vmem>>, vector<4x610xf32>
    %c12 = arith.constant 12 : index
    %c0_8 = arith.constant 0 : index
    %7 = vector.load %arg8[%c12, %c0_8] : memref<36x610xf32, #tpu.memory_space<vmem>>, vector<4x610xf32>
    tpu.vector_store %arg8[%c12, %c0_8], %6 {strides = array<i32>} : memref<36x610xf32, #tpu.memory_space<vmem>>, vector<4x610xf32>,
    %c0_9 = arith.constant 0 : index
    %c19 = arith.constant 19 : index
    %8 = vector.load %arg1[%c0_9, %c19] : memref<4x648xf32, #tpu.memory_space<vmem>>, vector<4x610xf32>
    %c16 = arith.constant 16 : index
    %c0_10 = arith.constant 0 : index
    %9 = vector.load %arg8[%c16, %c0_10] : memref<36x610xf32, #tpu.memory_space<vmem>>, vector<4x610xf32>
    tpu.vector_store %arg8[%c16, %c0_10], %8 {strides = array<i32>} : memref<36x610xf32, #tpu.memory_space<vmem>>, vector<4x610xf32>,
    %c0_11 = arith.constant 0 : index
    %c20 = arith.constant 20 : index
    %10 = vector.load %arg1[%c0_11, %c20] : memref<4x648xf32, #tpu.memory_space<vmem>>, vector<4x610xf32>
    %c20_12 = arith.constant 20 : index
    %c0_13 = arith.constant 0 : index
    %11 = vector.load %arg8[%c20_12, %c0_13] : memref<36x610xf32, #tpu.memory_space<vmem>>, vector<4x610xf32>
    tpu.vector_store %arg8[%c20_12, %c0_13], %10 {strides = array<i32>} : memref<36x610xf32, #tpu.memory_space<vmem>>, vector<4x610xf32>,
    %c0_14 = arith.constant 0 : index
    %c36 = arith.constant 36 : index
    %12 = vector.load %arg1[%c0_14, %c36] : memref<4x648xf32, #tpu.memory_space<vmem>>, vector<4x610xf32>
    %c24 = arith.constant 24 : index
    %c0_15 = arith.constant 0 : index
    %13 = vector.load %arg8[%c24, %c0_15] : memref<36x610xf32, #tpu.memory_space<vmem>>, vector<4x610xf32>
    tpu.vector_store %arg8[%c24, %c0_15], %12 {strides = array<i32>} : memref<36x610xf32, #tpu.memory_space<vmem>>, vector<4x610xf32>,
    %c0_16 = arith.constant 0 : index
    %c37 = arith.constant 37 : index
    %14 = vector.load %arg1[%c0_16, %c37] : memref<4x648xf32, #tpu.memory_space<vmem>>, vector<4x610xf32>
    %c28 = arith.constant 28 : index
    %c0_17 = arith.constant 0 : index
    %15 = vector.load %arg8[%c28, %c0_17] : memref<36x610xf32, #tpu.memory_space<vmem>>, vector<4x610xf32>
    tpu.vector_store %arg8[%c28, %c0_17], %14 {strides = array<i32>} : memref<36x610xf32, #tpu.memory_space<vmem>>, vector<4x610xf32>,
    %c0_18 = arith.constant 0 : index
    %c38 = arith.constant 38 : index
    %16 = vector.load %arg1[%c0_18, %c38] : memref<4x648xf32, #tpu.memory_space<vmem>>, vector<4x610xf32>
    %c32 = arith.constant 32 : index
    %c0_19 = arith.constant 0 : index
    %17 = vector.load %arg8[%c32, %c0_19] : memref<36x610xf32, #tpu.memory_space<vmem>>, vector<4x610xf32>
    tpu.vector_store %arg8[%c32, %c0_19], %16 {strides = array<i32>} : memref<36x610xf32, #tpu.memory_space<vmem>>, vector<4x610xf32>,
    %c0_20 = arith.constant 0 : index
    %c0_21 = arith.constant 0 : index
    %18 = vector.load %arg2[%c0_20, %c0_21] : memref<4x36xf32, #tpu.memory_space<vmem>>, vector<4x36xf32>
    %c0_22 = arith.constant 0 : index
    %c0_23 = arith.constant 0 : index
    %19 = vector.load %arg8[%c0_22, %c0_23] : memref<36x610xf32, #tpu.memory_space<vmem>>, vector<36x610xf32>
    %cst = arith.constant dense<0.000000e+00> : vector<4x610xf32>
    %20 = tpu.matmul %18, %19, %cst {dimension_numbers = #tpu.dot_dimension_numbers<[1], [0], [0], [1], [0, 0, 1, 1], [], []>} : vector<4x36xf32>, vector<36x610xf32>, vector<4x610xf32> -> vector<4x610xf32>
    %c0_24 = arith.constant 0 : index
    %c0_25 = arith.constant 0 : index
    %21 = vector.load %arg6[%c0_24, %c0_25] : memref<2x610xf32, #tpu.memory_space<vmem>>, vector<1x610xf32>
    %c1_26 = arith.constant 1 : index
    %c0_27 = arith.constant 0 : index
    %22 = vector.load %arg6[%c1_26, %c0_27] : memref<2x610xf32, #tpu.memory_space<vmem>>, vector<1x610xf32>
    %23 = vector.broadcast %21 : vector<1x610xf32> to vector<4x610xf32>
    %24 = arith.mulf %20, %23 : vector<4x610xf32>
    %cst_28 = arith.constant dense<0.000000e+00> : vector<4xf32>
    %25 = vector.multi_reduction <add>, %24, %cst_28 [1] : vector<4x610xf32> to vector<4xf32>
    %26 = vector.shape_cast %25 : vector<4xf32> to vector<4x1xf32>
    %cst_29 = arith.constant 0.001953125 : f32
    %27 = vector.broadcast %cst_29 : f32 to vector<4x1xf32>
    %28 = arith.mulf %26, %27 : vector<4x1xf32>
    %29 = vector.broadcast %28 : vector<4x1xf32> to vector<4x610xf32>
    %30 = arith.subf %20, %29 : vector<4x610xf32>
    %31 = vector.broadcast %21 : vector<1x610xf32> to vector<4x610xf32>
    %32 = arith.mulf %30, %31 : vector<4x610xf32>
    %33 = arith.mulf %32, %32 : vector<4x610xf32>
    %cst_30 = arith.constant dense<0.000000e+00> : vector<4xf32>
    %34 = vector.multi_reduction <add>, %33, %cst_30 [1] : vector<4x610xf32> to vector<4xf32>
    %35 = vector.shape_cast %34 : vector<4xf32> to vector<4x1xf32>
    %cst_31 = arith.constant 0.001953125 : f32
    %36 = vector.broadcast %cst_31 : f32 to vector<4x1xf32>
    %37 = arith.mulf %35, %36 : vector<4x1xf32>
    %c0_32 = arith.constant 0 : index
    %c0_33 = arith.constant 0 : index
    %38 = vector.load %arg4[%c0_32, %c0_33] : memref<4x2xf32, #tpu.memory_space<vmem>>, vector<4x1xf32>
    %cst_34 = arith.constant 9.99999974E-6 : f32
    %39 = vector.broadcast %cst_34 : f32 to vector<4x1xf32>
    %40 = arith.addf %37, %39 : vector<4x1xf32>
    %41 = math.rsqrt %40 : vector<4x1xf32>
    %42 = arith.mulf %38, %41 : vector<4x1xf32>
    %c0_35 = arith.constant 0 : index
    %c1_36 = arith.constant 1 : index
    %43 = vector.load %arg4[%c0_35, %c1_36] : memref<4x2xf32, #tpu.memory_space<vmem>>, vector<4x1xf32>
    %44 = arith.mulf %28, %42 : vector<4x1xf32>
    %45 = arith.subf %43, %44 : vector<4x1xf32>
    %46 = vector.broadcast %42 : vector<4x1xf32> to vector<4x610xf32>
    %47 = arith.mulf %20, %46 : vector<4x610xf32>
    %48 = vector.broadcast %45 : vector<4x1xf32> to vector<4x610xf32>
    %49 = arith.addf %47, %48 : vector<4x610xf32>
    %cst_37 = arith.constant 0.000000e+00 : f32
    %50 = vector.broadcast %cst_37 : f32 to vector<4x610xf32>
    %51 = arith.maximumf %49, %50 : vector<4x610xf32>
    %52 = vector.broadcast %21 : vector<1x610xf32> to vector<4x610xf32>
    %53 = arith.mulf %51, %52 : vector<4x610xf32>
    %cst_38 = arith.constant 0.000000e+00 : f32
    %54 = vector.broadcast %cst_38 : f32 to vector<4x128xf32>
    %c0_39 = arith.constant 0 : index
    %c0_40 = arith.constant 0 : index
    %55 = vector.load %arg9[%c0_39, %c0_40] : memref<4x757xf32, #tpu.memory_space<vmem>>, vector<4x128xf32>
    tpu.vector_store %arg9[%c0_39, %c0_40], %54 {strides = array<i32>} : memref<4x757xf32, #tpu.memory_space<vmem>>, vector<4x128xf32>,
    %cst_41 = arith.constant 0.000000e+00 : f32
    %56 = vector.broadcast %cst_41 : f32 to vector<4x117xf32>
    %c0_42 = arith.constant 0 : index
    %c640 = arith.constant 640 : index
    %57 = vector.load %arg9[%c0_42, %c640] : memref<4x757xf32, #tpu.memory_space<vmem>>, vector<4x117xf32>
    tpu.vector_store %arg9[%c0_42, %c640], %56 {strides = array<i32>} : memref<4x757xf32, #tpu.memory_space<vmem>>, vector<4x117xf32>,
    %c0_43 = arith.constant 0 : index
    %c128 = arith.constant 128 : index
    %58 = vector.load %arg9[%c0_43, %c128] : memref<4x757xf32, #tpu.memory_space<vmem>>, vector<4x610xf32>
    tpu.vector_store %arg9[%c0_43, %c128], %53 {strides = array<i32>} : memref<4x757xf32, #tpu.memory_space<vmem>>, vector<4x610xf32>,
    %c0_44 = arith.constant 0 : index
    %c109 = arith.constant 109 : index
    %59 = vector.load %arg9[%c0_44, %c109] : memref<4x757xf32, #tpu.memory_space<vmem>>, vector<4x610xf32>
    %c0_45 = arith.constant 0 : index
    %c0_46 = arith.constant 0 : index
    %60 = vector.load %arg8[%c0_45, %c0_46] : memref<36x610xf32, #tpu.memory_space<vmem>>, vector<4x610xf32>
    tpu.vector_store %arg8[%c0_45, %c0_46], %59 {strides = array<i32>} : memref<36x610xf32, #tpu.memory_space<vmem>>, vector<4x610xf32>,
    %c0_47 = arith.constant 0 : index
    %c110 = arith.constant 110 : index
    %61 = vector.load %arg9[%c0_47, %c110] : memref<4x757xf32, #tpu.memory_space<vmem>>, vector<4x610xf32>
    %c4_48 = arith.constant 4 : index
    %c0_49 = arith.constant 0 : index
    %62 = vector.load %arg8[%c4_48, %c0_49] : memref<36x610xf32, #tpu.memory_space<vmem>>, vector<4x610xf32>
    tpu.vector_store %arg8[%c4_48, %c0_49], %61 {strides = array<i32>} : memref<36x610xf32, #tpu.memory_space<vmem>>, vector<4x610xf32>,
    %c0_50 = arith.constant 0 : index
    %c111 = arith.constant 111 : index
    %63 = vector.load %arg9[%c0_50, %c111] : memref<4x757xf32, #tpu.memory_space<vmem>>, vector<4x610xf32>
    %c8_51 = arith.constant 8 : index
    %c0_52 = arith.constant 0 : index
    %64 = vector.load %arg8[%c8_51, %c0_52] : memref<36x610xf32, #tpu.memory_space<vmem>>, vector<4x610xf32>
    tpu.vector_store %arg8[%c8_51, %c0_52], %63 {strides = array<i32>} : memref<36x610xf32, #tpu.memory_space<vmem>>, vector<4x610xf32>,
    %c0_53 = arith.constant 0 : index
    %c127 = arith.constant 127 : index
    %65 = vector.load %arg9[%c0_53, %c127] : memref<4x757xf32, #tpu.memory_space<vmem>>, vector<4x610xf32>
    %c12_54 = arith.constant 12 : index
    %c0_55 = arith.constant 0 : index
    %66 = vector.load %arg8[%c12_54, %c0_55] : memref<36x610xf32, #tpu.memory_space<vmem>>, vector<4x610xf32>
    tpu.vector_store %arg8[%c12_54, %c0_55], %65 {strides = array<i32>} : memref<36x610xf32, #tpu.memory_space<vmem>>, vector<4x610xf32>,
    %c0_56 = arith.constant 0 : index
    %c128_57 = arith.constant 128 : index
    %67 = vector.load %arg9[%c0_56, %c128_57] : memref<4x757xf32, #tpu.memory_space<vmem>>, vector<4x610xf32>
    %c16_58 = arith.constant 16 : index
    %c0_59 = arith.constant 0 : index
    %68 = vector.load %arg8[%c16_58, %c0_59] : memref<36x610xf32, #tpu.memory_space<vmem>>, vector<4x610xf32>
    tpu.vector_store %arg8[%c16_58, %c0_59], %67 {strides = array<i32>} : memref<36x610xf32, #tpu.memory_space<vmem>>, vector<4x610xf32>,
    %c0_60 = arith.constant 0 : index
    %c129 = arith.constant 129 : index
    %69 = vector.load %arg9[%c0_60, %c129] : memref<4x757xf32, #tpu.memory_space<vmem>>, vector<4x610xf32>
    %c20_61 = arith.constant 20 : index
    %c0_62 = arith.constant 0 : index
    %70 = vector.load %arg8[%c20_61, %c0_62] : memref<36x610xf32, #tpu.memory_space<vmem>>, vector<4x610xf32>
    tpu.vector_store %arg8[%c20_61, %c0_62], %69 {strides = array<i32>} : memref<36x610xf32, #tpu.memory_space<vmem>>, vector<4x610xf32>,
    %c0_63 = arith.constant 0 : index
    %c145 = arith.constant 145 : index
    %71 = vector.load %arg9[%c0_63, %c145] : memref<4x757xf32, #tpu.memory_space<vmem>>, vector<4x610xf32>
    %c24_64 = arith.constant 24 : index
    %c0_65 = arith.constant 0 : index
    %72 = vector.load %arg8[%c24_64, %c0_65] : memref<36x610xf32, #tpu.memory_space<vmem>>, vector<4x610xf32>
    tpu.vector_store %arg8[%c24_64, %c0_65], %71 {strides = array<i32>} : memref<36x610xf32, #tpu.memory_space<vmem>>, vector<4x610xf32>,
    %c0_66 = arith.constant 0 : index
    %c146 = arith.constant 146 : index
    %73 = vector.load %arg9[%c0_66, %c146] : memref<4x757xf32, #tpu.memory_space<vmem>>, vector<4x610xf32>
    %c28_67 = arith.constant 28 : index
    %c0_68 = arith.constant 0 : index
    %74 = vector.load %arg8[%c28_67, %c0_68] : memref<36x610xf32, #tpu.memory_space<vmem>>, vector<4x610xf32>
    tpu.vector_store %arg8[%c28_67, %c0_68], %73 {strides = array<i32>} : memref<36x610xf32, #tpu.memory_space<vmem>>, vector<4x610xf32>,
    %c0_69 = arith.constant 0 : index
    %c147 = arith.constant 147 : index
    %75 = vector.load %arg9[%c0_69, %c147] : memref<4x757xf32, #tpu.memory_space<vmem>>, vector<4x610xf32>
    %c32_70 = arith.constant 32 : index
    %c0_71 = arith.constant 0 : index
    %76 = vector.load %arg8[%c32_70, %c0_71] : memref<36x610xf32, #tpu.memory_space<vmem>>, vector<4x610xf32>
    tpu.vector_store %arg8[%c32_70, %c0_71], %75 {strides = array<i32>} : memref<36x610xf32, #tpu.memory_space<vmem>>, vector<4x610xf32>,
    %c0_72 = arith.constant 0 : index
    %c0_73 = arith.constant 0 : index
    %77 = vector.load %arg3[%c0_72, %c0_73] : memref<4x36xf32, #tpu.memory_space<vmem>>, vector<4x36xf32>
    %c0_74 = arith.constant 0 : index
    %c0_75 = arith.constant 0 : index
    %78 = vector.load %arg8[%c0_74, %c0_75] : memref<36x610xf32, #tpu.memory_space<vmem>>, vector<36x610xf32>
    %cst_76 = arith.constant dense<0.000000e+00> : vector<4x610xf32>
    %79 = tpu.matmul %77, %78, %cst_76 {dimension_numbers = #tpu.dot_dimension_numbers<[1], [0], [0], [1], [0, 0, 1, 1], [], []>} : vector<4x36xf32>, vector<36x610xf32>, vector<4x610xf32> -> vector<4x610xf32>
    %80 = vector.broadcast %22 : vector<1x610xf32> to vector<4x610xf32>
    %81 = arith.mulf %79, %80 : vector<4x610xf32>
    %cst_77 = arith.constant dense<0.000000e+00> : vector<4xf32>
    %82 = vector.multi_reduction <add>, %81, %cst_77 [1] : vector<4x610xf32> to vector<4xf32>
    %83 = vector.shape_cast %82 : vector<4xf32> to vector<4x1xf32>
    %cst_78 = arith.constant 7.812500e-03 : f32
    %84 = vector.broadcast %cst_78 : f32 to vector<4x1xf32>
    %85 = arith.mulf %83, %84 : vector<4x1xf32>
    %86 = vector.broadcast %85 : vector<4x1xf32> to vector<4x610xf32>
    %87 = arith.subf %79, %86 : vector<4x610xf32>
    %88 = vector.broadcast %22 : vector<1x610xf32> to vector<4x610xf32>
    %89 = arith.mulf %87, %88 : vector<4x610xf32>
    %90 = arith.mulf %89, %89 : vector<4x610xf32>
    %cst_79 = arith.constant dense<0.000000e+00> : vector<4xf32>
    %91 = vector.multi_reduction <add>, %90, %cst_79 [1] : vector<4x610xf32> to vector<4xf32>
    %92 = vector.shape_cast %91 : vector<4xf32> to vector<4x1xf32>
    %cst_80 = arith.constant 7.812500e-03 : f32
    %93 = vector.broadcast %cst_80 : f32 to vector<4x1xf32>
    %94 = arith.mulf %92, %93 : vector<4x1xf32>
    %c0_81 = arith.constant 0 : index
    %c0_82 = arith.constant 0 : index
    %95 = vector.load %arg5[%c0_81, %c0_82] : memref<4x2xf32, #tpu.memory_space<vmem>>, vector<4x1xf32>
    %cst_83 = arith.constant 9.99999974E-6 : f32
    %96 = vector.broadcast %cst_83 : f32 to vector<4x1xf32>
    %97 = arith.addf %94, %96 : vector<4x1xf32>
    %98 = math.rsqrt %97 : vector<4x1xf32>
    %99 = arith.mulf %95, %98 : vector<4x1xf32>
    %c0_84 = arith.constant 0 : index
    %c1_85 = arith.constant 1 : index
    %100 = vector.load %arg5[%c0_84, %c1_85] : memref<4x2xf32, #tpu.memory_space<vmem>>, vector<4x1xf32>
    %101 = arith.mulf %85, %99 : vector<4x1xf32>
    %102 = arith.subf %100, %101 : vector<4x1xf32>
    %103 = vector.broadcast %99 : vector<4x1xf32> to vector<4x610xf32>
    %104 = arith.mulf %79, %103 : vector<4x610xf32>
    %105 = vector.broadcast %102 : vector<4x1xf32> to vector<4x610xf32>
    %106 = arith.addf %104, %105 : vector<4x610xf32>
    %cst_86 = arith.constant 0.000000e+00 : f32
    %107 = vector.broadcast %cst_86 : f32 to vector<4x610xf32>
    %108 = arith.maximumf %106, %107 : vector<4x610xf32>
    %c0_87 = arith.constant 0 : index
    %c0_88 = arith.constant 0 : index
    %109 = vector.load %arg7[%c0_87, %c0_88] : memref<4x610xf32, #tpu.memory_space<vmem>>, vector<4x610xf32>
    tpu.vector_store %arg7[%c0_87, %c0_88], %108 {strides = array<i32>} : memref<4x610xf32, #tpu.memory_space<vmem>>, vector<4x610xf32>,
    return
  }
  func.func @transform_0(%arg0: i32) -> (i32, i32) {
    %c0_i32 = arith.constant 0 : i32
    %c0_i32_0 = arith.constant 0 : i32
    %c0_i32_1 = arith.constant 0 : i32
    return %c0_i32, %c0_i32_0 : i32, i32
  }
  func.func @transform_1(%arg0: i32) -> (i32, i32) {
    %c0_i32 = arith.constant 0 : i32
    %c0_i32_0 = arith.constant 0 : i32
    %c0_i32_1 = arith.constant 0 : i32
    return %c0_i32, %c0_i32_0 : i32, i32
  }
  func.func @transform_2(%arg0: i32) -> (i32, i32) {
    %c0_i32 = arith.constant 0 : i32
    %c0_i32_0 = arith.constant 0 : i32
    %c0_i32_1 = arith.constant 0 : i32
    return %c0_i32, %c0_i32_0 : i32, i32
  }
  func.func @transform_3(%arg0: i32) -> (i32, i32) {
    %c0_i32 = arith.constant 0 : i32
    %c0_i32_0 = arith.constant 0 : i32
    %c0_i32_1 = arith.constant 0 : i32
    return %c0_i32, %c0_i32_0 : i32, i32
  }
  func.func @transform_4(%arg0: i32) -> (i32, i32) {
    %c0_i32 = arith.constant 0 : i32
    %c0_i32_0 = arith.constant 0 : i32
    %c0_i32_1 = arith.constant 0 : i32
    return %c0_i32, %c0_i32_0 : i32, i32
  }
  func.func @transform_5(%arg0: i32) -> (i32, i32) {
    %c0_i32 = arith.constant 0 : i32
    %c0_i32_0 = arith.constant 0 : i32
    %c0_i32_1 = arith.constant 0 : i32
    return %c0_i32, %c0_i32_0 : i32, i32
  }
  func.func @transform_6(%arg0: i32) -> (i32, i32) {
    %c0_i32 = arith.constant 0 : i32
    %c0_i32_0 = arith.constant 0 : i32
    %c0_i32_1 = arith.constant 0 : i32
    return %c0_i32, %c0_i32_0 : i32, i32
  }
}

</mosaic_0001>

<bundles_post_ra>
// kernel: down_forward.1
= control target key start
LH: loop header
LB: loop body
LE: loop exit
PB: predicated region body
PF: predicated region fallthrough
CT: control target
= control target key end

     0   :  { %s1518_s25 = smov 126   ;;  %s1519_s26 = smov 127   ;;  %vm36_vm0 = vcmask 797696   ;;  %v1526_v14 = vmov 0.0   ;;  %vm91_vm1 = vcmask 1031168   ;;  %vm57_vm2 = vcmask 1039360   ;;  %s2056_s0 = inlined_call_operand.vmem [shape: f32[4,648], index: 0, kind: input, shape index: {}]   ;;  %s2057_s1 = inlined_call_operand.vmem [shape: f32[4,36], index: 1, kind: input, shape index: {}]   ;;  %s2058_s5 = inlined_call_operand.vmem [shape: f32[2,610], index: 5, kind: input, shape index: {}]   ;;  %s2059_s3 = inlined_call_operand.vmem [shape: f32[4,2], index: 3, kind: input, shape index: {}]   ;;  %s2060_s2 = inlined_call_operand.vmem [shape: f32[4,36], index: 2, kind: input, shape index: {}]   ;;  %s2061_s4 = inlined_call_operand.vmem [shape: f32[4,2], index: 4, kind: input, shape index: {}]   ;;  %s2062_s6 = inlined_call_operand.vmem [shape: f32[4,610], index: 6, kind: output, shape index: {}]  }
   0x1   :  { %v1574_v0 = vld [vmem:[%s2056_s0 + $0x8] sm:$0xff]  ;;  %v1579_v1 = vld [vmem:[%s2056_s0] sm:$0xff]  ;;  %s1520_s27 = smov 110   ;;  %s1521_s28 = smov 109   ;;  %v25_v6 = vld [vmem:[%s2056_s0 + $0x10] sm:$0xf]  ;;  %428 = vmatprep.mubr.f32.mxu0 %v1526_v14  ;;  %499 = vmatprep.mubr.f32.mxu1 %v1526_v14 }
   0x2   :  { %85 = vrot.lane.b32.xlu1 %v1574_v0, %s1518_s25  ;;  %v1585_v2 = vcombine.high %v1574_v0, %v1574_v0  ;;  %49 = vrot.lane.b32.xlu0 %v1579_v1, %s1519_s26  ;;  %v79_v3 = vcombine.high %v1579_v1, %v1579_v1  ;;  %32 = vst [vmem:[#allocation2] sm:$0xf] %v1579_v1  ;;  %34 = vst [vmem:[#allocation2 + $0x10] sm:$0xf] %v1574_v0  ;;  %s1522_s29 = smov 108   ;;  %s1523_s30 = smov 92  }
   0x3   :  { %v45_v4 = vcombine.low %v1574_v0, %v1574_v0  ;;  %v44_v5 = vcombine.low %v1579_v1, %v1579_v1  ;;  %s1524_s7 = smov 91   ;;  %37 = vst.msk [vmem:[#allocation2 + $0x20] sm:$0xf] %vm36_vm0, %v25_v6  ;;  %v1497_v7 = vld [vmem:[%s2056_s0 + $0x10] ss:$0 sps:$4 sm:$0xff]   ;;  %s1525_s22 = smov 90  }
   0x4   :  { %33 = vst [vmem:[#allocation2 + $0x8] sm:$0xf] %v79_v3  ;;  %35 = vst [vmem:[#allocation2 + $0x18] sm:$0xf] %v1585_v2  ;;  %v75_v8 = vld [vmem:[%s2056_s0 + $0x10] sm:$0xf] }
   0x5   :  { %v1498_v9 = vld [vmem:[%s2056_s0 + $0x10] ss:$0 sps:$4 sm:$0xff]   ;;  %689 = vst [vmem:[#allocation3] sm:$0xf] %v1526_v14  ;;  %vm125_vm3 = vcmask 900096   ;;  %vm158_vm4 = vcmask 891904  }
   0x6   :  { %83 = vrot.lane.b32.xlu1 %v79_v3, %s1518_s25  ;;  %51 = vrot.lane.b32.xlu0 %v45_v4, %s1519_s26  ;;  %v142_v10 = vld [vmem:[%s2056_s0 + $0x10] sm:$0xf]  ;;  %vm192_vm5 = vcmask 883712   ;;  %vm228_vm6 = vcmask 752640   ;;  %vm265_vm7 = vcmask 744448   ;;  %vm71_vm8 = vcmask 801796  }
   0x7   :  { %v1499_v11 = vld [vmem:[%s2056_s0 + $0x10] ss:$0 sps:$4 sm:$0xff]   ;;  %vm302_vm9 = vcmask 736256   ;;  %vm348_vm10 = vcmask 1043456   ;;  %vm344_vm11 = vcmask 293888   ;;  %vm1528_vm12 = vmmov 0  }
   0x8   :  { %v209_v12 = vld [vmem:[%s2056_s0 + $0x10] sm:$0xff]  ;;  %vm690_vm13 = vcmask 953344   ;;  %s1534_s8 = smov 18   ;;  %s1535_s9 = smov 17   ;;  %vm761_vm14 = vcmask 146432   ;;  %vm835_vm15 = vcmask 7168  }
   0x9   :  { %v252_v13 = vcombine.low %v209_v12, %v209_v12  ;;  %v215_v15 = vcombine.high %v209_v12, %v209_v12  ;;  %691 = vst.msk [vmem:[#allocation3 + $0x14] sm:$0xf] %vm690_vm13, %v1526_v14 }
   0xa   :  { %119 = vrot.lane.b32.xlu1 %v45_v4, %s1520_s27  ;;  %117 = vrot.lane.b32.xlu0 %v1579_v1, %s1520_s27 }
   0xe   :  { %81 = vrot.lane.b32.xlu1 %v1579_v1, %s1518_s25  ;;  %47 = vrot.lane.b32.xlu0 %v44_v5, %s1519_s26 }
  0x12   :  { %150 = vrot.lane.b32.xlu1 %v79_v3, %s1521_s28  ;;  %115 = vrot.lane.b32.xlu0 %v44_v5, %s1520_s27 }
  0x16   :  { %184 = vrot.lane.b32.xlu1 %v1579_v1, %s1522_s29  ;;  %152 = vrot.lane.b32.xlu0 %v1574_v0, %s1521_s28 }
  0x1a   :  { %218 = vrot.lane.b32.xlu1 %v79_v3, %s1523_s30  ;;  %186 = vrot.lane.b32.xlu0 %v45_v4, %s1522_s29 }
  0x1e   :  { %255 = vrot.lane.b32.xlu1 %v1579_v1, %s1524_s7  ;;  %220 = vrot.lane.b32.xlu0 %v1574_v0, %s1523_s30 }
  0x22   :  { %148 = vrot.lane.b32.xlu1 %v1579_v1, %s1521_s28  ;;  %257 = vrot.lane.b32.xlu0 %v45_v4, %s1524_s7 }
  0x26   :  { %216 = vrot.lane.b32.xlu1 %v1579_v1, %s1523_s30  ;;  %182 = vrot.lane.b32.xlu0 %v44_v5, %s1522_s29 }
  0x2a   :  { %53 = vrot.lane.b32.xlu1 %v1574_v0, %s1519_s26  ;;  %253 = vrot.lane.b32.xlu0 %v44_v5, %s1524_s7 }
  0x2e   :  { %87 = vrot.lane.b32.xlu1 %v1585_v2, %s1518_s25  ;;  %55 = vrot.lane.b32.xlu0 %v1497_v7, %s1519_s26 }
  0x32   :  { %121 = vrot.lane.b32.xlu1 %v1574_v0, %s1520_s27  ;;  %89 = vrot.lane.b32.xlu0 %v75_v8, %s1518_s25 }
  0x36   :  { %154 = vrot.lane.b32.xlu1 %v1585_v2, %s1521_s28  ;;  %123 = vrot.lane.b32.xlu0 %v1498_v9, %s1520_s27 }
  0x3a   :  { %188 = vrot.lane.b32.xlu1 %v1574_v0, %s1522_s29  ;;  %156 = vrot.lane.b32.xlu0 %v142_v10, %s1521_s28 }
  0x3e   :  { %222 = vrot.lane.b32.xlu1 %v1585_v2, %s1523_s30  ;;  %190 = vrot.lane.b32.xlu0 %v1499_v11, %s1522_s29 }
  0x42   :  { %259 = vrot.lane.b32.xlu1 %v1574_v0, %s1524_s7  ;;  %224 = vrot.lane.b32.xlu0 %v209_v12, %s1523_s30 }
  0x46   :  { %292 = vrot.lane.b32.xlu1 %v79_v3, %s1525_s22  ;;  %261 = vrot.lane.b32.xlu0 %v252_v13, %s1524_s7 }
  0x4a   :  { %290 = vrot.lane.b32.xlu1 %v1579_v1, %s1525_s22  ;;  %294 = vrot.lane.b32.xlu0 %v1574_v0, %s1525_s22 }
  0x4e   :  { %263 = vrot.lane.b32.xlu1 %v209_v12, %s1524_s7  ;;  %226 = vrot.lane.b32.xlu0 %v215_v15, %s1523_s30  ;;  %s1531_s30 = smov 1   ;;  %s1533_s7 = smov 19  }
  0x52   :  { %298 = vrot.lane.b32.xlu1 %v209_v12, %s1525_s22  ;;  %296 = vrot.lane.b32.xlu0 %v1585_v2, %s1525_s22 }
  0x56   :  { %300 = vrot.lane.b32.xlu0 %v215_v15, %s1525_s22 }
  0x74   :  { %v1676_v16 = vpop.permute.xlu1 %85  ;;  %v50_v17 = vpop.permute.xlu0 %49 }
  0x78   :  { %v84_v18 = vpop.permute.xlu1 %83  ;;  %v52_v19 = vpop.permute.xlu0 %51 }
  0x79   :  { %v93_v20 = vsel %vm91_vm1, %v84_v18, %v1676_v16  ;;  %v59_v21 = vsel %vm57_vm2, %v50_v17, %v52_v19 }
  0x7a   :  { %102 = vst [vmem:[#allocation2 + $0x30] sm:$0xf] %v93_v20  ;;  %68 = vst [vmem:[#allocation2 + $0x8] sm:$0xf0] %v59_v21 }
  0x7c   :  { %v1681_v22 = vpop.permute.xlu1 %119  ;;  %v118_v23 = vpop.permute.xlu0 %117 }
  0x7d   :  { %v127_v24 = vsel %vm125_vm3, %v118_v23, %v1681_v22 }
  0x7e   :  { %136 = vst [vmem:[#allocation2 + $0x30] sm:$0xf0] %v127_v24 }
  0x80   :  { %v82_v25 = vpop.permute.xlu1 %81  ;;  %v48_v26 = vpop.permute.xlu0 %47 }
  0x81   :  { %v92_v27 = vsel %vm91_vm1, %v82_v25, %v84_v18  ;;  %v58_v28 = vsel %vm57_vm2, %v48_v26, %v50_v17  ;;  %v320_v32 = vld [vmem:[#allocation2 + $0x8] sm:$0xff] }
  0x82   :  { %101 = vst [vmem:[#allocation2 + $0x28] sm:$0xf] %v92_v27  ;;  %67 = vst [vmem:[#allocation2] sm:$0xf0] %v58_v28 }
  0x84   :  { %v151_v29 = vpop.permute.xlu1 %150  ;;  %v116_v30 = vpop.permute.xlu0 %115 }
  0x85   :  { %v126_v31 = vsel %vm125_vm3, %v116_v30, %v118_v23  ;;  %v325_v33 = vld [vmem:[#allocation2 + $0x30] sm:$0xff] }
  0x86   :  { %135 = vst [vmem:[#allocation2 + $0x28] sm:$0xf0] %v126_v31  ;;  %v1427_v34 = vpack.c.bf16 %v325_v33, %v320_v32 }
  0x88   :  { %v185_v35 = vpop.permute.xlu1 %184  ;;  %v1688_v36 = vpop.permute.xlu0 %152  ;;  %1428 = vmatprep.subr.bf16.mxu0 %v1427_v34 }
  0x89   :  { %v160_v37 = vsel %vm158_vm4, %v151_v29, %v1688_v36  ;;  %v319_v41 = vld [vmem:[#allocation2] sm:$0xff] }
  0x8a   :  { %169 = vst [vmem:[#allocation2 + $0x58] sm:$0xf] %v160_v37 }
  0x8c   :  { %v219_v38 = vpop.permute.xlu1 %218  ;;  %v1692_v39 = vpop.permute.xlu0 %186 }
  0x8d   :  { %v194_v40 = vsel %vm192_vm5, %v185_v35, %v1692_v39  ;;  %v324_v42 = vld [vmem:[#allocation2 + $0x28] sm:$0xff] }
  0x8e   :  { %203 = vst [vmem:[#allocation2 + $0x58] sm:$0xf0] %v194_v40  ;;  %v1429_v43 = vpack.c.bf16 %v324_v42, %v319_v41 }
  0x90   :  { %v256_v44 = vpop.permute.xlu1 %255  ;;  %v1696_v45 = vpop.permute.xlu0 %220  ;;  %1430 = vmatpush1.bf16.msra.mxu0 %v1429_v43 }
  0x91   :  { %v230_v46 = vsel %vm228_vm6, %v219_v38, %v1696_v45 }
  0x92   :  { %240 = vst [vmem:[#allocation2 + $0x80] sm:$0xf] %v230_v46 }
  0x94   :  { %v149_v47 = vpop.permute.xlu1 %148  ;;  %v1700_v48 = vpop.permute.xlu0 %257 }
  0x95   :  { %v159_v49 = vsel %vm158_vm4, %v149_v47, %v151_v29  ;;  %v267_v50 = vsel %vm265_vm7, %v256_v44, %v1700_v48  ;;  %v330_v59 = vld [vmem:[#allocation2 + $0x58] sm:$0xff] }
  0x96   :  { %168 = vst [vmem:[#allocation2 + $0x50] sm:$0xf] %v159_v49  ;;  %277 = vst [vmem:[#allocation2 + $0x80] sm:$0xf0] %v267_v50 }
  0x98   :  { %v217_v51 = vpop.permute.xlu1 %216  ;;  %v183_v52 = vpop.permute.xlu0 %182 }
  0x99   :  { %v229_v53 = vsel %vm228_vm6, %v217_v51, %v219_v38  ;;  %v193_v54 = vsel %vm192_vm5, %v183_v52, %v185_v35  ;;  %v318_v51 = vld [vmem:[%s2057_s1] sm:$0xf] }
  0x9a   :  { %239 = vst [vmem:[#allocation2 + $0x78] sm:$0xf] %v229_v53  ;;  %202 = vst [vmem:[#allocation2 + $0x50] sm:$0xf0] %v193_v54 }
  0x9c   :  { %v54_v55 = vpop.permute.xlu1 %53  ;;  %v254_v56 = vpop.permute.xlu0 %253 }
  0x9d   :  { %v60_v57 = vsel %vm57_vm2, %v52_v19, %v54_v55  ;;  %v266_v58 = vsel %vm265_vm7, %v254_v56, %v256_v44  ;;  %v335_v60 = vld [vmem:[#allocation2 + $0x80] sm:$0xff] }
  0x9e   :  { %69 = vst [vmem:[#allocation2 + $0x10] sm:$0xf0] %v60_v57  ;;  %276 = vst [vmem:[#allocation2 + $0x78] sm:$0xf0] %v266_v58  ;;  %v1431_v61 = vpack.c.bf16 %v335_v60, %v330_v59  ;;  %v1527_v60 = vmov 0.0|0.0  }
  0xa0   :  { %v88_v62 = vpop.permute.xlu1 %87  ;;  %v56_v63 = vpop.permute.xlu0 %55  ;;  %1432 = vmatprep.subr.bf16.mxu0 %v1431_v61 }
  0xa1   :  { %v94_v0 = vsel %vm91_vm1, %v1676_v16, %v88_v62  ;;  %v61_v1 = vsel %vm57_vm2, %v54_v55, %v56_v63  ;;  %72 = vst.msk [vmem:[#allocation2 + $0x20] sm:$0xf0] %vm71_vm8, %v56_v63  ;;  %v329_v6 = vld [vmem:[#allocation2 + $0x50] sm:$0xff] }
  0xa2   :  { %103 = vst [vmem:[#allocation2 + $0x38] sm:$0xf] %v94_v0  ;;  %70 = vst [vmem:[#allocation2 + $0x18] sm:$0xf0] %v61_v1 }
  0xa4   :  { %v122_v2 = vpop.permute.xlu1 %121  ;;  %v90_v3 = vpop.permute.xlu0 %89 }
  0xa5   :  { %v128_v4 = vsel %vm125_vm3, %v1681_v22, %v122_v2  ;;  %v95_v5 = vsel %vm91_vm1, %v88_v62, %v90_v3  ;;  %105 = vst.msk [vmem:[#allocation2 + $0x48] sm:$0xf] %vm36_vm0, %v90_v3  ;;  %v334_v7 = vld [vmem:[#allocation2 + $0x78] sm:$0xff]  ;;  %v321_v26 = vld [vmem:[#allocation2 + $0x10] sm:$0xff]  ;;  %vm724_vm1 = vcmask 154624  }
  0xa6   :  { %137 = vst [vmem:[#allocation2 + $0x38] sm:$0xf0] %v128_v4  ;;  %104 = vst [vmem:[#allocation2 + $0x40] sm:$0xf] %v95_v5  ;;  %v1433_v8 = vpack.c.bf16 %v334_v7, %v329_v6  ;;  %v580_v4 = vlaneseq }
  0xa7   :  { %v576_v7 = vld [vmem:[%s2058_s5] ss:$2 sm:$0x1f] }
  0xa8   :  { %v155_v9 = vpop.permute.xlu1 %154  ;;  %v124_v10 = vpop.permute.xlu0 %123  ;;  %1434 = vmatpush1.bf16.msra.mxu0 %v1433_v8  ;;  %v323_v57 = vld [vmem:[#allocation2 + $0x20] sm:$0xff]  ;;  %v1761_v5 = vshrl.u32 %v580_v4, 7 }
  0xa9   :  { %v161_v11 = vsel %vm158_vm4, %v1688_v36, %v155_v9  ;;  %v129_v12 = vsel %vm125_vm3, %v122_v2, %v124_v10  ;;  %139 = vst.msk [vmem:[#allocation2 + $0x48] sm:$0xf0] %vm71_vm8, %v124_v10  ;;  %v322_v23 = vld [vmem:[#allocation2 + $0x18] sm:$0xff] }
  0xaa   :  { %170 = vst [vmem:[#allocation2 + $0x60] sm:$0xf] %v161_v11  ;;  %138 = vst [vmem:[#allocation2 + $0x40] sm:$0xf0] %v129_v12  ;;  %v582_v6 = vsub.s32 0, %v1761_v5  ;;  %v586_v8 = vsub.s32 1, %v1761_v5 }
  0xac   :  { %v189_v13 = vpop.permute.xlu1 %188  ;;  %v157_v15 = vpop.permute.xlu0 %156  ;;  %v1774_v10 = vrot.slane %v576_v7, %v586_v8 }
  0xad   :  { %v195_v16 = vsel %vm192_vm5, %v1692_v39, %v189_v13  ;;  %v162_v17 = vsel %vm158_vm4, %v155_v9, %v157_v15  ;;  %172 = vst.msk [vmem:[#allocation2 + $0x70] sm:$0xf] %vm36_vm0, %v157_v15  ;;  %v326_v20 = vld [vmem:[#allocation2 + $0x38] sm:$0xff]  ;;  %v1770_v9 = vrot.slane %v576_v7, %v582_v6  ;;  %v590_v15 = vsub.s32 2, %v1761_v5 }
  0xae   :  { %204 = vst [vmem:[#allocation2 + $0x60] sm:$0xf0] %v195_v16  ;;  %171 = vst [vmem:[#allocation2 + $0x68] sm:$0xf] %v162_v17  ;;  %v1437_v27 = vpack.c.bf16 %v326_v20, %v321_v26  ;;  %v594_v17 = vsub.s32 3, %v1761_v5  ;;  %v598_v20 = vsub.s32 4, %v1761_v5 }
  0xb0   :  { %v223_v18 = vpop.permute.xlu1 %222  ;;  %v191_v19 = vpop.permute.xlu0 %190  ;;  %v328_v52 = vld [vmem:[#allocation2 + $0x48] sm:$0xff] }
  0xb1   :  { %v231_v21 = vsel %vm228_vm6, %v1696_v45, %v223_v18  ;;  %v196_v22 = vsel %vm192_vm5, %v189_v13, %v191_v19  ;;  %206 = vst.msk [vmem:[#allocation2 + $0x70] sm:$0xf0] %vm71_vm8, %v191_v19  ;;  %v327_v24 = vld [vmem:[#allocation2 + $0x40] sm:$0xff]  ;;  %v1444_v58 = vpack.c.bf16 %v328_v52, %v323_v57  ;;  %vm798_vm5 = vcmask 138240  }
  0xb2   :  { %241 = vst [vmem:[#allocation2 + $0x88] sm:$0xf] %v231_v21  ;;  %205 = vst [vmem:[#allocation2 + $0x68] sm:$0xf0] %v196_v22  ;;  %v1435_v25 = vpack.c.bf16 %v327_v24, %v322_v23  ;;  %v1791_v22 = vrot.slane %v576_v7, %v590_v15  ;;  %v1795_v23 = vrot.slane %v576_v7, %v594_v17 }
  0xb4   :  { %v260_v28 = vpop.permute.xlu1 %259  ;;  %v225_v29 = vpop.permute.xlu0 %224  ;;  %1436 = vmatprep.subr.bf16.mxu1 %v1435_v25  ;;  %v1801_v25 = vrot.slane %v576_v7, %v598_v20  ;;  %v1530_v7 = vmov 1  }
  0xb5   :  { %v268_v30 = vsel %vm265_vm7, %v1700_v48, %v260_v28  ;;  %v232_v31 = vsel %vm228_vm6, %v223_v18, %v225_v29  ;;  %1438 = vmatpush1.bf16.msra.mxu1 %v1437_v27  ;;  %v331_v47 = vld [vmem:[#allocation2 + $0x60] sm:$0xff]  ;;  %1492 = vset.pattern.permute.xlu0 %v1530_v7 }
  0xb6   :  { %278 = vst [vmem:[#allocation2 + $0x88] sm:$0xf0] %v268_v30  ;;  %242 = vst [vmem:[#allocation2 + $0x90] sm:$0xf] %v232_v31 }
  0xb8   :  { %v293_v32 = vpop.permute.xlu1 %292  ;;  %v262_v33 = vpop.permute.xlu0 %261  ;;  %v333_v62 = vld [vmem:[#allocation2 + $0x70] sm:$0xff] }
  0xb9   :  { %v269_v34 = vsel %vm265_vm7, %v260_v28, %v262_v33  ;;  %v332_v44 = vld [vmem:[#allocation2 + $0x68] sm:$0xff] }
  0xba   :  { %279 = vst [vmem:[#allocation2 + $0x90] sm:$0xf0] %v269_v34 }
  0xbc   :  { %v291_v35 = vpop.permute.xlu1 %290  ;;  %v295_v36 = vpop.permute.xlu0 %294 }
  0xbd   :  { %v303_v37 = vsel %vm302_vm9, %v291_v35, %v293_v32  ;;  %v304_v38 = vsel %vm302_vm9, %v293_v32, %v295_v36  ;;  %v336_v41 = vld [vmem:[#allocation2 + $0x88] sm:$0xff] }
  0xbe   :  { %313 = vst [vmem:[#allocation2 + $0xa0] sm:$0xf] %v303_v37  ;;  %314 = vst [vmem:[#allocation2 + $0xa8] sm:$0xf] %v304_v38  ;;  %v1441_v48 = vpack.c.bf16 %v336_v41, %v331_v47 }
  0xc0   :  { %v264_v39 = vpop.permute.xlu1 %263  ;;  %v227_v40 = vpop.permute.xlu0 %226 }
  0xc1   :  { %v270_v42 = vsel %vm265_vm7, %v262_v33, %v264_v39  ;;  %v233_v43 = vsel %vm228_vm6, %v225_v29, %v227_v40  ;;  %v337_v45 = vld [vmem:[#allocation2 + $0x90] sm:$0xff]  ;;  %vm916_vm6 = vcmask 908288  }
  0xc2   :  { %280 = vst.msk [vmem:[#allocation2 + $0x98] sm:$0xf0] %vm71_vm8, %v270_v42  ;;  %v1439_v46 = vpack.c.bf16 %v337_v45, %v332_v44 }
  0xc3   :  { %243 = vst.msk [vmem:[#allocation2 + $0x98] sm:$0xf] %vm36_vm0, %v233_v43 }
  0xc4   :  { %v299_v49 = vpop.permute.xlu1 %298  ;;  %v297_v50 = vpop.permute.xlu0 %296  ;;  %1440 = vmatprep.subr.bf16.mxu1 %v1439_v46 }
  0xc5   :  { %v305_v53 = vsel %vm302_vm9, %v295_v36, %v297_v50  ;;  %v306_v54 = vsel %vm302_vm9, %v297_v50, %v299_v49  ;;  %1442 = vmatpush1.bf16.msra.mxu1 %v1441_v48  ;;  %v340_v55 = vld [vmem:[#allocation2 + $0xa8] sm:$0xf]  ;;  %v339_v56 = vld [vmem:[#allocation2 + $0xa0] sm:$0xf] }
  0xc6   :  { %315 = vst [vmem:[#allocation2 + $0xb0] sm:$0xf] %v305_v53  ;;  %316 = vst [vmem:[#allocation2 + $0xb8] sm:$0xf] %v306_v54  ;;  %1372 = vmatprep.subr.msk.mxu0 %vm348_vm10, %v340_v55 }
  0xc7   :  { %1373 = vmatpush1.msk.msra.mxu0 %vm348_vm10, %v339_v56 }
  0xc8   :  { %v301_v59 = vpop.permute.xlu0 %300  ;;  %1443 = vmatprep.subr.bf16.mxu0 %v1527_v60  ;;  %1374 = vmatmul.mubr.msk.f32.vlgmr.msra.gmra.mrb[0].mxu0 %vm344_vm11, %v318_v51 }
  0xc9   :  { %v307_v61 = vsel %vm302_vm9, %v299_v49, %v301_v59  ;;  %1445 = vmatpush3.bf16.msra.mxu0 %v1444_v58  ;;  %1411 = vmatprep.mubr.msk.f32.mxu0 %vm1528_vm12, %v1526_v14 }
  0xca   :  { %v338_v63 = vld [vmem:[#allocation2 + $0x98] sm:$0xff]  ;;  %317 = vst.msk [vmem:[#allocation2 + $0xc0] sm:$0xf] %vm36_vm0, %v307_v61  ;;  %1446 = vmatprep.subr.bf16.mxu0 %v1527_v60 }
  0xcb   :  { %v1447_v0 = vpack.c.bf16 %v338_v63, %v333_v62 }
  0xcd   :  { %1448 = vmatpush3.bf16.msra.mxu0 %v1447_v0  ;;  %v342_v1 = vld [vmem:[#allocation2 + $0xb8] sm:$0xf]  ;;  %v341_v2 = vld [vmem:[#allocation2 + $0xb0] sm:$0xf] }
  0xce   :  { %1375 = vmatprep.subr.msk.mxu1 %vm348_vm10, %v342_v1  ;;  %1409 = vmatprep.subr.mxu0 %v1526_v14  ;;  %v1529_v1 = vmov 0  }
  0xcf   :  { %1376 = vmatpush1.msk.msra.mxu1 %vm348_vm10, %v341_v2  ;;  %1489 = vset.pattern.permute.xlu1 %v1529_v1 }
  0xd0   :  { %1377 = vmatmul.mubr.msk.f32.vlgmr.msra.gmra.mrb[0].mxu1 %vm344_vm11, %v318_v51 }
  0xd1   :  { %v343_v3 = vld [vmem:[#allocation2 + $0xc0] sm:$0xf]  ;;  %1104 = vmatprep.mubr.f32.mxu1 %v1526_v14 }
  0xd2   :  { %1410 = vmatpush3.msk.msra.mxu0 %vm348_vm10, %v343_v3 }
  0xd3   :  { %1412 = vmatmul.mubr.msk.f32.vlgmr.msra.gmra.mrb[2].mxu0 %vm344_vm11, %v318_v51 }
  0xd4   :  { %1175 = vmatprep.mubr.f32.mxu0 %v1526_v14 }
 0x19b   :  { %v1776_v11 = vpop.f32.mrb[0].mxu0 }
 0x19c   :  { %v605_v12 = vmul.f32 %v1770_v9, %v1776_v11  ;;  %v1780_v13 = vpop.f32.mrb[1].mxu0 }
 0x19d   :  { %v606_v16 = vmul.f32 %v1774_v10, %v1780_v13 }
 0x19e   :  { %v610_v18 = vsel %vm348_vm10, %v605_v12, 0.0  ;;  %v649_v12 = vld [vmem:[%s2059_s3] sm:$0xf]  ;;  %s1532_s3 = smov 111  }
 0x19f   :  { %v611_v19 = vsel %vm348_vm10, %v606_v16, 0.0 }
 0x1a0   :  { %v612_v21 = vadd.f32 %v611_v19, %v610_v18 }
 0x1a3   :  { %v1797_v24 = vpop.f32.mrb[0].mxu1 }
 0x1a4   :  { %v607_v26 = vmul.f32 %v1791_v22, %v1797_v24  ;;  %v1805_v27 = vpop.f32.mrb[1].mxu1 }
 0x1a5   :  { %v608_v28 = vmul.f32 %v1795_v23, %v1805_v27 }
 0x1a6   :  { %v613_v29 = vsel %vm348_vm10, %v607_v26, 0.0  ;;  %v1810_v30 = vpop.f32.mrb[2].mxu0 }
 0x1a7   :  { %v609_v31 = vmul.f32 %v1801_v25, %v1810_v30  ;;  %v1413_v32 = vpop.f32.mrb[3].mxu0  ;;  %v614_v33 = vadd.f32 %v613_v29, %v612_v21  ;;  %v615_v34 = vsel %vm348_vm10, %v608_v28, 0.0 }
 0x1a9   :  { %v616_v35 = vadd.f32 %v615_v34, %v614_v33  ;;  %v617_v36 = vsel %vm36_vm0, %v609_v31, 0.0 }
 0x1ab   :  { %v618_v37 = vadd.f32 %v617_v36, %v616_v35 }
 0x1ad   :  { %619 = vadd.xlane.f32.xlu1 %v618_v37 }
 0x23a   :  { %v620_v38 = vpop.xlane.xlu1 %619 }
 0x23b   :  { %v621_v39 = vmul.f32 0.001953125, %v620_v38 }
 0x23d   :  { %v622_v40 = vsub.f32 %v1776_v11, %v621_v39  ;;  %v623_v41 = vsub.f32 %v1780_v13, %v621_v39  ;;  %v624_v42 = vsub.f32 %v1797_v24, %v621_v39  ;;  %v625_v43 = vsub.f32 %v1805_v27, %v621_v39 }
 0x23e   :  { %v626_v44 = vsub.f32 %v1810_v30, %v621_v39 }
 0x23f   :  { %v627_v45 = vmul.f32 %v622_v40, %v1770_v9  ;;  %v628_v46 = vmul.f32 %v623_v41, %v1774_v10  ;;  %v629_v47 = vmul.f32 %v624_v42, %v1791_v22  ;;  %v630_v48 = vmul.f32 %v625_v43, %v1795_v23 }
 0x240   :  { %v631_v49 = vmul.f32 %v626_v44, %v1801_v25 }
 0x241   :  { %v632_v50 = vmul.f32 %v627_v45, %v627_v45  ;;  %v633_v51 = vmul.f32 %v628_v46, %v628_v46  ;;  %v634_v52 = vmul.f32 %v629_v47, %v629_v47  ;;  %v635_v53 = vmul.f32 %v630_v48, %v630_v48 }
 0x242   :  { %v636_v57 = vmul.f32 %v631_v49, %v631_v49 }
 0x243   :  { %v637_v54 = vsel %vm348_vm10, %v632_v50, 0.0  ;;  %v638_v55 = vsel %vm348_vm10, %v633_v51, 0.0  ;;  %v640_v58 = vsel %vm348_vm10, %v634_v52, 0.0  ;;  %v642_v61 = vsel %vm348_vm10, %v635_v53, 0.0 }
 0x244   :  { %v639_v56 = vadd.f32 %v638_v55, %v637_v54  ;;  %v644_v63 = vsel %vm36_vm0, %v636_v57, 0.0 }
 0x246   :  { %v641_v59 = vadd.f32 %v640_v58, %v639_v56 }
 0x248   :  { %v643_v62 = vadd.f32 %v642_v61, %v641_v59 }
 0x24a   :  { %v645_v0 = vadd.f32 %v644_v63, %v643_v62 }
 0x24c   :  { %646 = vadd.xlane.f32.xlu0 %v645_v0 }
 0x2d9   :  { %v647_v2 = vpop.xlane.xlu0 %646 }
 0x2da   :  { %v648_v3 = vmul.f32 0.001953125, %v647_v2 }
 0x2dc   :  { %v650_v4 = vadd.f32 1e-05, %v648_v3 }
 0x2de   :  { %1510 = vrsqrt.f32 %v650_v4 }
 0x2e8   :  { %v1511_v16 = vpop.eup %1510 }
 0x2e9   :  { %v652_v18 = vmul.f32 %v1511_v16, %v649_v12 }
 0x2eb   :  { %661 = vperm.xlu1 %1489, %v652_v18   ;;  %v653_v19 = vmul.f32 %v652_v18, %v621_v39 }
 0x2ed   :  { %655 = vrot.lane.b32.xlu0 %v653_v19, %s1531_s30 }
 0x2ef   :  { %1490 = vset.pattern.permute.xlu1 %v1530_v7 }
 0x35f   :  { %v656_v21 = vpop.permute.xlu0 %655 }
 0x360   :  { %v658_v26 = vsub.f32 %v649_v12, %v656_v21 }
 0x362   :  { %671 = vperm.xlu1 %1490, %v658_v26  }
 0x366   :  { %1491 = vset.pattern.permute.xlu1 %v1529_v1 }
 0x36a   :  { %v662_v28 = vpop.permute.xlu1 %661 }
 0x36b   :  { %v664_v29 = vmul.f32 %v662_v28, %v1776_v11  ;;  %v665_v31 = vmul.f32 %v662_v28, %v1780_v13  ;;  %v666_v32 = vmul.f32 %v662_v28, %v1797_v24  ;;  %v667_v33 = vmul.f32 %v662_v28, %v1805_v27 }
 0x36c   :  { %v668_v34 = vmul.f32 %v662_v28, %v1810_v30 }
 0x3e1   :  { %v672_v35 = vpop.permute.xlu1 %671 }
 0x3e2   :  { %v674_v36 = vadd.f32 %v672_v35, %v664_v29  ;;  %v675_v37 = vadd.f32 %v672_v35, %v665_v31  ;;  %v676_v38 = vadd.f32 %v672_v35, %v666_v32  ;;  %v677_v39 = vadd.f32 %v672_v35, %v667_v33 }
 0x3e3   :  { %v678_v40 = vadd.f32 %v672_v35, %v668_v34 }
 0x3e4   :  { %v679_v41 = vmax.f32 %v674_v36, 0.0  ;;  %v680_v42 = vmax.f32 %v675_v37, 0.0  ;;  %v681_v43 = vmax.f32 %v676_v38, 0.0  ;;  %v682_v44 = vmax.f32 %v677_v39, 0.0 }
 0x3e5   :  { %v683_v45 = vmax.f32 %v678_v40, 0.0 }
 0x3e6   :  { %v684_v11 = vmul.f32 %v679_v41, %v1770_v9  ;;  %v685_v13 = vmul.f32 %v680_v42, %v1774_v10  ;;  %v686_v24 = vmul.f32 %v681_v43, %v1791_v22  ;;  %v687_v27 = vmul.f32 %v682_v44, %v1795_v23 }
 0x3e7   :  { %v688_v30 = vmul.f32 %v683_v45, %v1801_v25 }
 0x3e8   :  { %v1846_v46 = vcombine.low %v684_v11, %v685_v13  ;;  %v697_v47 = vcombine.low %v686_v24, %v687_v27  ;;  %v1850_v48 = vcombine.low %v687_v27, %v687_v27  ;;  %v1515_v49 = vcombine.low %v685_v13, %v685_v13 }
 0x3e9   :  { %702 = vst.msk [vmem:[#allocation3 + $0x14] sm:$0xf] %vm36_vm0, %v688_v30  ;;  %v1516_v55 = vcombine.low %v686_v24, %v686_v24  ;;  %v1517_v57 = vcombine.low %v684_v11, %v684_v11 }
 0x3ea   :  { %700 = vst [vmem:[#allocation3 + $0x4] sm:$0xff] %v1846_v46  ;;  %701 = vst [vmem:[#allocation3 + $0xc] sm:$0xff] %v697_v47 }
 0x3eb   :  { %860 = vst [vmem:[#allocation2 + $0x50] sm:$0xf] %v1846_v46  ;;  %862 = vst [vmem:[#allocation2 + $0x60] sm:$0xf] %v697_v47 }
 0x3ec   :  { %861 = vst [vmem:[#allocation2 + $0x58] sm:$0xf] %v1515_v49  ;;  %863 = vst [vmem:[#allocation2 + $0x68] sm:$0xf] %v1850_v48 }
 0x3f0   :  { %v900_v9 = vld [vmem:[#allocation3 + $0x14] sm:$0xf] }
 0x3f1   :  { %914 = vrot.lane.b32.xlu0 %v900_v9, %s1532_s3  ;;  %v704_v10 = vld [vmem:[#allocation3 + $0x8] sm:$0xff]  ;;  %v853_v22 = vld [vmem:[#allocation3 + $0x14] sm:$0xf]  ;;  %v740_v23 = vld [vmem:[#allocation3] sm:$0xff] }
 0x3f2   :  { %716 = vrot.lane.b32.xlu1 %v704_v10, %s1533_s7  ;;  %864 = vst.msk [vmem:[#allocation2 + $0x70] sm:$0xf] %vm36_vm0, %v853_v22  ;;  %v705_v25 = vld [vmem:[#allocation3 + $0x10] sm:$0xff]  ;;  %v747_v50 = vcombine.low %v704_v10, %v704_v10  ;;  %v746_v53 = vcombine.low %v740_v23, %v740_v23  ;;  %v709_v54 = vcombine.high %v740_v23, %v740_v23 }
 0x3f3   :  { %v1507_v51 = vld [vmem:[#allocation3 + $0x14] ss:$0 sps:$4 sm:$0xff]   ;;  %v710_v56 = vcombine.high %v704_v10, %v704_v10  ;;  %v748_v58 = vcombine.low %v705_v25, %v705_v25  ;;  %v711_v59 = vcombine.high %v705_v25, %v705_v25 }
 0x3f4   :  { %v1508_v52 = vld [vmem:[#allocation3 + $0x14] ss:$0 sps:$4 sm:$0xff]  }
 0x3f5   :  { %751 = vrot.lane.b32.xlu0 %v740_v23, %s1534_s8  ;;  %v966_v61 = vld [vmem:[#allocation3 + $0x14] sm:$0xf] }
 0x3f6   :  { %790 = vrot.lane.b32.xlu1 %v704_v10, %s1535_s9 }
 0x3f9   :  { %825 = vrot.lane.b32.xlu0 %v740_v23, %s1531_s30 }
 0x3fa   :  { %910 = vrot.lane.b32.xlu1 %v697_v47, %s1532_s3 }
 0x3fd   :  { %712 = vrot.lane.b32.xlu0 %v740_v23, %s1533_s7 }
 0x3fe   :  { %906 = vrot.lane.b32.xlu1 %v1846_v46, %s1532_s3 }
 0x401   :  { %786 = vrot.lane.b32.xlu0 %v740_v23, %s1535_s9 }
 0x402   :  { %755 = vrot.lane.b32.xlu1 %v704_v10, %s1534_s8 }
 0x405   :  { %876 = vrot.lane.b32.xlu0 %v1846_v46, %s1519_s26 }
 0x406   :  { %829 = vrot.lane.b32.xlu1 %v704_v10, %s1531_s30 }
 0x409   :  { %942 = vrot.lane.b32.xlu0 %v1846_v46, %s1520_s27 }
 0x40a   :  { %880 = vrot.lane.b32.xlu1 %v697_v47, %s1519_s26 }
 0x40d   :  { %720 = vrot.lane.b32.xlu0 %v705_v25, %s1533_s7 }
 0x40e   :  { %946 = vrot.lane.b32.xlu1 %v697_v47, %s1520_s27 }
 0x411   :  { %794 = vrot.lane.b32.xlu0 %v705_v25, %s1535_s9 }
 0x412   :  { %753 = vrot.lane.b32.xlu1 %v747_v50, %s1534_s8 }
 0x415   :  { %882 = vrot.lane.b32.xlu0 %v1507_v51, %s1519_s26 }
 0x416   :  { %827 = vrot.lane.b32.xlu1 %v747_v50, %s1531_s30 }
 0x419   :  { %948 = vrot.lane.b32.xlu0 %v1508_v52, %s1520_s27 }
 0x41a   :  { %749 = vrot.lane.b32.xlu1 %v746_v53, %s1534_s8 }
 0x41d   :  { %976 = vrot.lane.b32.xlu0 %v697_v47, %s1521_s28 }
 0x41e   :  { %823 = vrot.lane.b32.xlu1 %v746_v53, %s1531_s30 }
 0x421   :  { %714 = vrot.lane.b32.xlu0 %v709_v54, %s1533_s7 }
 0x422   :  { %878 = vrot.lane.b32.xlu1 %v1516_v55, %s1519_s26 }
 0x425   :  { %788 = vrot.lane.b32.xlu0 %v709_v54, %s1535_s9 }
 0x426   :  { %944 = vrot.lane.b32.xlu1 %v1516_v55, %s1520_s27 }
 0x429   :  { %908 = vrot.lane.b32.xlu0 %v1515_v49, %s1532_s3 }
 0x42a   :  { %718 = vrot.lane.b32.xlu1 %v710_v56, %s1533_s7 }
 0x42d   :  { %874 = vrot.lane.b32.xlu0 %v1517_v57, %s1519_s26 }
 0x42e   :  { %792 = vrot.lane.b32.xlu1 %v710_v56, %s1535_s9 }
 0x431   :  { %940 = vrot.lane.b32.xlu0 %v1517_v57, %s1520_s27 }
 0x432   :  { %912 = vrot.lane.b32.xlu1 %v1850_v48, %s1532_s3 }
 0x435   :  { %757 = vrot.lane.b32.xlu0 %v748_v58, %s1534_s8 }
 0x436   :  { %974 = vrot.lane.b32.xlu1 %v1515_v49, %s1521_s28 }
 0x439   :  { %831 = vrot.lane.b32.xlu0 %v748_v58, %s1531_s30 }
 0x43a   :  { %722 = vrot.lane.b32.xlu1 %v711_v59, %s1533_s7 }
 0x43d   :  { %759 = vrot.lane.b32.xlu0 %v705_v25, %s1534_s8 }
 0x43e   :  { %796 = vrot.lane.b32.xlu1 %v711_v59, %s1535_s9 }
 0x441   :  { %833 = vrot.lane.b32.xlu0 %v705_v25, %s1531_s30 }
 0x442   :  { %972 = vrot.lane.b32.xlu1 %v1846_v46, %s1521_s28 }
 0x445   :  { %978 = vrot.lane.b32.xlu0 %v1850_v48, %s1521_s28 }
 0x446   :  { %980 = vrot.lane.b32.xlu1 %v966_v61, %s1521_s28 }
 0x463   :  { %v1905_v62 = vpop.permute.xlu0 %914 }
 0x464   :  { %930 = vst.msk [vmem:[#allocation2 + $0x98] sm:$0xf] %vm36_vm0, %v1905_v62  ;;  %v1909_v63 = vpop.permute.xlu1 %716 }
 0x467   :  { %v752_v0 = vpop.permute.xlu0 %751 }
 0x468   :  { %v1911_v1 = vpop.permute.xlu1 %790 }
 0x46b   :  { %v826_v2 = vpop.permute.xlu0 %825 }
 0x46c   :  { %v1913_v3 = vpop.permute.xlu1 %910 }
 0x46f   :  { %v713_v4 = vpop.permute.xlu0 %712 }
 0x470   :  { %v907_v7 = vpop.permute.xlu1 %906 }
 0x473   :  { %v787_v12 = vpop.permute.xlu0 %786 }
 0x474   :  { %v1915_v16 = vpop.permute.xlu1 %755 }
 0x477   :  { %v1917_v18 = vpop.permute.xlu0 %876 }
 0x478   :  { %v1919_v19 = vpop.permute.xlu1 %829 }
 0x47b   :  { %v1921_v21 = vpop.permute.xlu0 %942 }
 0x47c   :  { %v881_v26 = vpop.permute.xlu1 %880 }
 0x47f   :  { %v1923_v28 = vpop.permute.xlu0 %720 }
 0x480   :  { %v947_v29 = vpop.permute.xlu1 %946 }
 0x483   :  { %v1925_v31 = vpop.permute.xlu0 %794 }
 0x484   :  { %v754_v32 = vpop.permute.xlu1 %753 }
 0x485   :  { %v763_v33 = vsel %vm761_vm14, %v752_v0, %v754_v32  ;;  %v764_v34 = vsel %vm761_vm14, %v754_v32, %v1915_v16 }
 0x486   :  { %773 = vst [vmem:[#allocation2 + $0x8] sm:$0xf0] %v763_v33  ;;  %774 = vst [vmem:[#allocation2 + $0x10] sm:$0xf0] %v764_v34 }
 0x487   :  { %v883_v35 = vpop.permute.xlu0 %882 }
 0x488   :  { %v887_v36 = vsel %vm57_vm2, %v881_v26, %v883_v35  ;;  %897 = vst.msk [vmem:[#allocation2 + $0x70] sm:$0xf0] %vm71_vm8, %v883_v35  ;;  %v828_v37 = vpop.permute.xlu1 %827 }
 0x489   :  { %896 = vst [vmem:[#allocation2 + $0x68] sm:$0xf0] %v887_v36  ;;  %v837_v38 = vsel %vm835_vm15, %v826_v2, %v828_v37  ;;  %v838_v39 = vsel %vm835_vm15, %v828_v37, %v1919_v19 }
 0x48a   :  { %847 = vst [vmem:[#allocation2 + $0x30] sm:$0xf0] %v837_v38  ;;  %848 = vst [vmem:[#allocation2 + $0x38] sm:$0xf0] %v838_v39 }
 0x48b   :  { %v949_v40 = vpop.permute.xlu0 %948 }
 0x48c   :  { %v953_v41 = vsel %vm125_vm3, %v947_v29, %v949_v40  ;;  %963 = vst.msk [vmem:[#allocation2 + $0x98] sm:$0xf0] %vm71_vm8, %v949_v40  ;;  %v750_v42 = vpop.permute.xlu1 %749 }
 0x48d   :  { %962 = vst [vmem:[#allocation2 + $0x90] sm:$0xf0] %v953_v41  ;;  %v762_v43 = vsel %vm761_vm14, %v750_v42, %v752_v0 }
 0x48e   :  { %772 = vst [vmem:[#allocation2] sm:$0xf0] %v762_v43 }
 0x48f   :  { %v1938_v44 = vpop.permute.xlu0 %976 }
 0x490   :  { %v824_v45 = vpop.permute.xlu1 %823 }
 0x491   :  { %v836_v11 = vsel %vm835_vm15, %v824_v45, %v826_v2 }
 0x492   :  { %846 = vst [vmem:[#allocation2 + $0x28] sm:$0xf0] %v836_v11 }
 0x493   :  { %v715_v13 = vpop.permute.xlu0 %714 }
 0x494   :  { %v725_v24 = vsel %vm724_vm1, %v713_v4, %v715_v13  ;;  %v726_v27 = vsel %vm724_vm1, %v715_v13, %v1909_v63  ;;  %v879_v30 = vpop.permute.xlu1 %878 }
 0x495   :  { %735 = vst [vmem:[#allocation2] sm:$0xf] %v725_v24  ;;  %736 = vst [vmem:[#allocation2 + $0x8] sm:$0xf] %v726_v27  ;;  %v885_v46 = vsel %vm57_vm2, %v1917_v18, %v879_v30  ;;  %v886_v47 = vsel %vm57_vm2, %v879_v30, %v881_v26 }
 0x496   :  { %894 = vst [vmem:[#allocation2 + $0x58] sm:$0xf0] %v885_v46  ;;  %895 = vst [vmem:[#allocation2 + $0x60] sm:$0xf0] %v886_v47 }
 0x497   :  { %v789_v48 = vpop.permute.xlu0 %788 }
 0x498   :  { %v799_v49 = vsel %vm798_vm5, %v787_v12, %v789_v48  ;;  %v800_v9 = vsel %vm798_vm5, %v789_v48, %v1911_v1  ;;  %v945_v10 = vpop.permute.xlu1 %944 }
 0x499   :  { %809 = vst [vmem:[#allocation2 + $0x28] sm:$0xf] %v799_v49  ;;  %810 = vst [vmem:[#allocation2 + $0x30] sm:$0xf] %v800_v9  ;;  %v951_v22 = vsel %vm125_vm3, %v1921_v21, %v945_v10  ;;  %v952_v23 = vsel %vm125_vm3, %v945_v10, %v947_v29  ;;  %v1010_v10 = vld [vmem:[#allocation2 + $0x68] sm:$0xff] }
 0x49a   :  { %960 = vst [vmem:[#allocation2 + $0x80] sm:$0xf0] %v951_v22  ;;  %961 = vst [vmem:[#allocation2 + $0x88] sm:$0xf0] %v952_v23 }
 0x49b   :  { %v909_v25 = vpop.permute.xlu0 %908 }
 0x49c   :  { %v917_v50 = vsel %vm916_vm6, %v907_v7, %v909_v25  ;;  %v918_v51 = vsel %vm916_vm6, %v909_v25, %v1913_v3  ;;  %v719_v52 = vpop.permute.xlu1 %718  ;;  %v998_v56 = vld [vmem:[#allocation2 + $0x8] sm:$0xff]  ;;  %v997_v61 = vld [vmem:[#allocation2] sm:$0xff] }
 0x49d   :  { %926 = vst [vmem:[#allocation2 + $0x78] sm:$0xf] %v917_v50  ;;  %927 = vst [vmem:[#allocation2 + $0x80] sm:$0xf] %v918_v51  ;;  %v727_v53 = vsel %vm724_vm1, %v1909_v63, %v719_v52  ;;  %v728_v54 = vsel %vm724_vm1, %v719_v52, %v1923_v28  ;;  %v1008_v29 = vld [vmem:[#allocation2 + $0x58] sm:$0xff] }
 0x49e   :  { %737 = vst [vmem:[#allocation2 + $0x10] sm:$0xf] %v727_v53  ;;  %738 = vst [vmem:[#allocation2 + $0x18] sm:$0xf] %v728_v54  ;;  %v1009_v53 = vld [vmem:[#allocation2 + $0x60] sm:$0xff] }
 0x49f   :  { %v875_v55 = vpop.permute.xlu0 %874 }
 0x4a0   :  { %v884_v57 = vsel %vm57_vm2, %v875_v55, %v1917_v18  ;;  %v793_v58 = vpop.permute.xlu1 %792  ;;  %v1003_v59 = vld [vmem:[#allocation2 + $0x30] sm:$0xff]  ;;  %v1002_v0 = vld [vmem:[#allocation2 + $0x28] sm:$0xff]  ;;  %v996_v55 = vld [vmem:[%s2060_s2] sm:$0xf] }
 0x4a1   :  { %893 = vst [vmem:[#allocation2 + $0x50] sm:$0xf0] %v884_v57  ;;  %v801_v2 = vsel %vm798_vm5, %v1911_v1, %v793_v58  ;;  %v802_v63 = vsel %vm798_vm5, %v793_v58, %v1925_v31  ;;  %v1449_v4 = vpack.c.bf16 %v1003_v59, %v998_v56  ;;  %v1451_v7 = vpack.c.bf16 %v1002_v0, %v997_v61  ;;  %v1016_v59 = vld [vmem:[#allocation2 + $0x98] sm:$0xff]  ;;  %v1011_v0 = vld [vmem:[#allocation2 + $0x70] sm:$0xff] }
 0x4a2   :  { %811 = vst [vmem:[#allocation2 + $0x38] sm:$0xf] %v801_v2  ;;  %812 = vst [vmem:[#allocation2 + $0x40] sm:$0xf] %v802_v63  ;;  %v1469_v63 = vpack.c.bf16 %v1016_v59, %v1011_v0 }
 0x4a3   :  { %1450 = vmatprep.subr.bf16.mxu1 %v1449_v4  ;;  %v941_v12 = vpop.permute.xlu0 %940 }
 0x4a4   :  { %v950_v18 = vsel %vm125_vm3, %v941_v12, %v1921_v21  ;;  %1452 = vmatpush1.bf16.msra.mxu1 %v1451_v7  ;;  %v913_v26 = vpop.permute.xlu1 %912  ;;  %v1013_v32 = vld [vmem:[#allocation2 + $0x80] sm:$0xff] }
 0x4a5   :  { %959 = vst [vmem:[#allocation2 + $0x78] sm:$0xf0] %v950_v18  ;;  %v919_v1 = vsel %vm916_vm6, %v1913_v3, %v913_v26  ;;  %v920_v33 = vsel %vm916_vm6, %v913_v26, %v1905_v62  ;;  %v1453_v34 = vpack.c.bf16 %v1013_v32, %v1008_v29  ;;  %v999_v9 = vld [vmem:[#allocation2 + $0x10] sm:$0xff] }
 0x4a6   :  { %928 = vst [vmem:[#allocation2 + $0x88] sm:$0xf] %v919_v1  ;;  %929 = vst [vmem:[#allocation2 + $0x90] sm:$0xf] %v920_v33 }
 0x4a7   :  { %1454 = vmatprep.subr.bf16.mxu1 %v1453_v34  ;;  %v758_v35 = vpop.permute.xlu0 %757 }
 0x4a8   :  { %v765_v36 = vsel %vm761_vm14, %v1915_v16, %v758_v35  ;;  %v975_v21 = vpop.permute.xlu1 %974  ;;  %v1007_v62 = vld [vmem:[#allocation2 + $0x50] sm:$0xff] }
 0x4a9   :  { %775 = vst [vmem:[#allocation2 + $0x18] sm:$0xf0] %v765_v36  ;;  %v983_v37 = vsel %vm158_vm4, %v975_v21, %v1938_v44 }
 0x4aa   :  { %992 = vst [vmem:[#allocation2 + $0xa8] sm:$0xf] %v983_v37 }
 0x4ab   :  { %v832_v38 = vpop.permute.xlu0 %831 }
 0x4ac   :  { %v839_v3 = vsel %vm835_vm15, %v1919_v19, %v832_v38  ;;  %v723_v39 = vpop.permute.xlu1 %722  ;;  %v1012_v40 = vld [vmem:[#allocation2 + $0x78] sm:$0xff] }
 0x4ad   :  { %849 = vst [vmem:[#allocation2 + $0x40] sm:$0xf0] %v839_v3  ;;  %v729_v41 = vsel %vm724_vm1, %v1923_v28, %v723_v39  ;;  %v1455_v42 = vpack.c.bf16 %v1012_v40, %v1007_v62  ;;  %v1004_v28 = vld [vmem:[#allocation2 + $0x38] sm:$0xff]  ;;  %v1015_v47 = vld [vmem:[#allocation2 + $0x90] sm:$0xff]  ;;  %v1014_v25 = vld [vmem:[#allocation2 + $0x88] sm:$0xff] }
 0x4ae   :  { %739 = vst.msk [vmem:[#allocation2 + $0x20] sm:$0xf] %vm36_vm0, %v729_v41  ;;  %v1461_v23 = vpack.c.bf16 %v1015_v47, %v1010_v10  ;;  %v1463_v54 = vpack.c.bf16 %v1014_v25, %v1009_v53 }
 0x4af   :  { %1456 = vmatpush1.bf16.msra.mxu1 %v1455_v42  ;;  %v760_v16 = vpop.permute.xlu0 %759 }
 0x4b0   :  { %v766_v43 = vsel %vm761_vm14, %v758_v35, %v760_v16  ;;  %v797_v45 = vpop.permute.xlu1 %796  ;;  %v1000_v30 = vld [vmem:[#allocation2 + $0x18] sm:$0xff] }
 0x4b1   :  { %776 = vst.msk [vmem:[#allocation2 + $0x20] sm:$0xf0] %vm71_vm8, %v766_v43  ;;  %v803_v19 = vsel %vm798_vm5, %v1925_v31, %v797_v45  ;;  %v1018_v11 = vld [vmem:[#allocation2 + $0xa8] sm:$0xf]  ;;  %v1459_v31 = vpack.c.bf16 %v1004_v28, %v999_v9 }
 0x4b2   :  { %813 = vst.msk [vmem:[#allocation2 + $0x48] sm:$0xf] %vm36_vm0, %v803_v19  ;;  %1381 = vmatprep.subr.msk.mxu1 %vm348_vm10, %v1018_v11 }
 0x4b3   :  { %v834_v13 = vpop.permute.xlu0 %833 }
 0x4b4   :  { %v840_v24 = vsel %vm835_vm15, %v832_v38, %v834_v13  ;;  %v973_v27 = vpop.permute.xlu1 %972  ;;  %v1005_v46 = vld [vmem:[#allocation2 + $0x40] sm:$0xff] }
 0x4b5   :  { %850 = vst.msk [vmem:[#allocation2 + $0x48] sm:$0xf0] %vm71_vm8, %v840_v24  ;;  %v982_v48 = vsel %vm158_vm4, %v973_v27, %v975_v21  ;;  %v1457_v49 = vpack.c.bf16 %v1005_v46, %v1000_v30 }
 0x4b6   :  { %991 = vst [vmem:[#allocation2 + $0xa0] sm:$0xf] %v982_v48 }
 0x4b7   :  { %1458 = vmatprep.subr.bf16.mxu0 %v1457_v49  ;;  %v979_v22 = vpop.permute.xlu0 %978 }
 0x4b8   :  { %v984_v50 = vsel %vm158_vm4, %v1938_v44, %v979_v22  ;;  %1460 = vmatpush1.bf16.msra.mxu0 %v1459_v31  ;;  %v981_v51 = vpop.permute.xlu1 %980  ;;  %v1001_v58 = vld [vmem:[#allocation2 + $0x20] sm:$0xff] }
 0x4b9   :  { %993 = vst [vmem:[#allocation2 + $0xb0] sm:$0xf] %v984_v50  ;;  %v985_v52 = vsel %vm158_vm4, %v979_v22, %v981_v51  ;;  %995 = vst.msk [vmem:[#allocation2 + $0xc0] sm:$0xf] %vm36_vm0, %v981_v51  ;;  %1462 = vmatprep.subr.bf16.mxu0 %v1461_v23 }
 0x4ba   :  { %994 = vst [vmem:[#allocation2 + $0xb8] sm:$0xf] %v985_v52 }
 0x4bc   :  { %1464 = vmatpush1.bf16.msra.mxu0 %v1463_v54  ;;  %v1006_v56 = vld [vmem:[#allocation2 + $0x48] sm:$0xff] }
 0x4bd   :  { %v1017_v57 = vld [vmem:[#allocation2 + $0xa0] sm:$0xf]  ;;  %v1466_v44 = vpack.c.bf16 %v1006_v56, %v1001_v58 }
 0x4be   :  { %1382 = vmatpush1.msk.msra.mxu1 %vm348_vm10, %v1017_v57  ;;  %v1322_v57 = vld [vmem:[%s2061_s4] sm:$0xf] }
 0x4bf   :  { %1383 = vmatmul.mubr.msk.f32.vlgmr.msra.gmra.mrb[2].mxu1 %vm344_vm11, %v996_v55  ;;  %1465 = vmatprep.subr.bf16.mxu1 %v1527_v60 }
 0x4c0   :  { %1467 = vmatpush3.bf16.msra.mxu1 %v1466_v44  ;;  %1424 = vmatprep.mubr.msk.f32.mxu1 %vm1528_vm12, %v1526_v14  ;;  %v1019_v2 = vld [vmem:[#allocation2 + $0xb0] sm:$0xf]  ;;  %v1021_v4 = vld [vmem:[#allocation2 + $0xc0] sm:$0xf] }
 0x4c1   :  { %v1020_v61 = vld [vmem:[#allocation2 + $0xb8] sm:$0xf]  ;;  %1468 = vmatprep.subr.bf16.mxu1 %v1527_v60  ;;  %v1380_v60 = vld [vmem:[%s2058_s5 + $0x1] ss:$2 sm:$0x1f] }
 0x4c2   :  { %1384 = vmatprep.subr.msk.mxu0 %vm348_vm10, %v1020_v61  ;;  %v1256_v7 = vrot.slane %v1380_v60, %v582_v6  ;;  %v1260_v12 = vrot.slane %v1380_v60, %v586_v8  ;;  %v1264_v32 = vrot.slane %v1380_v60, %v590_v15  ;;  %v1268_v33 = vrot.slane %v1380_v60, %v594_v17 }
 0x4c3   :  { %1385 = vmatpush1.msk.msra.mxu0 %vm348_vm10, %v1019_v2  ;;  %v1272_v37 = vrot.slane %v1380_v60, %v598_v20 }
 0x4c4   :  { %1386 = vmatmul.mubr.msk.f32.vlgmr.msra.gmra.mrb[4].mxu0 %vm344_vm11, %v996_v55  ;;  %1470 = vmatpush3.bf16.msra.mxu1 %v1469_v63 }
 0x4c5   :  { %1422 = vmatprep.subr.mxu1 %v1526_v14 }
 0x4c8   :  { %1423 = vmatpush3.msk.msra.mxu1 %vm348_vm10, %v1021_v4 }
 0x4c9   :  { %1425 = vmatmul.mubr.msk.f32.vlgmr.msra.gmra.mrb[4].mxu1 %vm344_vm11, %v996_v55 }
 0x592   :  { %v2016_v18 = vpop.f32.mrb[2].mxu1 }
 0x593   :  { %v1278_v26 = vmul.f32 %v1256_v7, %v2016_v18  ;;  %v2019_v14 = vpop.f32.mrb[3].mxu1 }
 0x594   :  { %v1279_v29 = vmul.f32 %v1260_v12, %v2019_v14 }
 0x595   :  { %v1283_v1 = vsel %vm348_vm10, %v1278_v26, 0.0 }
 0x596   :  { %v1284_v6 = vsel %vm348_vm10, %v1279_v29, 0.0 }
 0x597   :  { %v1285_v34 = vadd.f32 %v1284_v6, %v1283_v1  ;;  %v1177_v8 = vpop.f32.mrb[4].mxu0 }
 0x598   :  { %v1280_v35 = vmul.f32 %v1264_v32, %v1177_v8  ;;  %v1179_v36 = vpop.f32.mrb[5].mxu0 }
 0x599   :  { %v1281_v21 = vmul.f32 %v1268_v33, %v1179_v36 }
 0x59a   :  { %v1286_v38 = vsel %vm348_vm10, %v1280_v35, 0.0 }
 0x59b   :  { %v1288_v3 = vsel %vm348_vm10, %v1281_v21, 0.0  ;;  %v1287_v15 = vadd.f32 %v1286_v38, %v1285_v34 }
 0x59c   :  { %v1248_v39 = vpop.f32.mrb[4].mxu1 }
 0x59d   :  { %v1282_v62 = vmul.f32 %v1272_v37, %v1248_v39  ;;  %v1426_v40 = vpop.f32.mrb[5].mxu1  ;;  %v1289_v41 = vadd.f32 %v1288_v3, %v1287_v15 }
 0x59f   :  { %v1290_v17 = vsel %vm36_vm0, %v1282_v62, 0.0 }
 0x5a0   :  { %v1291_v42 = vadd.f32 %v1290_v17, %v1289_v41 }
 0x5a2   :  { %1292 = vadd.xlane.f32.xlu0 %v1291_v42 }
 0x62f   :  { %v1293_v16 = vpop.xlane.xlu0 %1292 }
 0x630   :  { %v1294_v43 = vmul.f32 0.0078125, %v1293_v16 }
 0x632   :  { %v1295_v45 = vsub.f32 %v2016_v18, %v1294_v43  ;;  %v1296_v5 = vsub.f32 %v2019_v14, %v1294_v43  ;;  %v1297_v20 = vsub.f32 %v1177_v8, %v1294_v43  ;;  %v1298_v19 = vsub.f32 %v1179_v36, %v1294_v43 }
 0x633   :  { %v1299_v11 = vsub.f32 %v1248_v39, %v1294_v43 }
 0x634   :  { %v1300_v13 = vmul.f32 %v1295_v45, %v1256_v7  ;;  %v1301_v28 = vmul.f32 %v1296_v5, %v1260_v12  ;;  %v1302_v24 = vmul.f32 %v1297_v20, %v1264_v32  ;;  %v1303_v27 = vmul.f32 %v1298_v19, %v1268_v33 }
 0x635   :  { %v1304_v30 = vmul.f32 %v1299_v11, %v1272_v37 }
 0x636   :  { %v1305_v46 = vmul.f32 %v1300_v13, %v1300_v13  ;;  %v1306_v47 = vmul.f32 %v1301_v28, %v1301_v28  ;;  %v1307_v48 = vmul.f32 %v1302_v24, %v1302_v24  ;;  %v1308_v49 = vmul.f32 %v1303_v27, %v1303_v27 }
 0x637   :  { %v1309_v22 = vmul.f32 %v1304_v30, %v1304_v30 }
 0x638   :  { %v1310_v9 = vsel %vm348_vm10, %v1305_v46, 0.0  ;;  %v1311_v31 = vsel %vm348_vm10, %v1306_v47, 0.0  ;;  %v1313_v23 = vsel %vm348_vm10, %v1307_v48, 0.0  ;;  %v1315_v50 = vsel %vm348_vm10, %v1308_v49, 0.0 }
 0x639   :  { %v1312_v10 = vadd.f32 %v1311_v31, %v1310_v9  ;;  %v1317_v52 = vsel %vm36_vm0, %v1309_v22, 0.0 }
 0x63b   :  { %v1314_v25 = vadd.f32 %v1313_v23, %v1312_v10 }
 0x63d   :  { %v1316_v51 = vadd.f32 %v1315_v50, %v1314_v25 }
 0x63f   :  { %v1318_v53 = vadd.f32 %v1317_v52, %v1316_v51 }
 0x641   :  { %1319 = vadd.xlane.f32.xlu1 %v1318_v53 }
 0x6ce   :  { %v1320_v54 = vpop.xlane.xlu1 %1319 }
 0x6cf   :  { %v1321_v55 = vmul.f32 0.0078125, %v1320_v54 }
 0x6d1   :  { %v1323_v56 = vadd.f32 1e-05, %v1321_v55 }
 0x6d3   :  { %1512 = vrsqrt.f32 %v1323_v56 }
 0x6dd   :  { %v1513_v58 = vpop.eup %1512 }
 0x6de   :  { %v1325_v44 = vmul.f32 %v1513_v58, %v1322_v57 }
 0x6e0   :  { %1334 = vperm.xlu1 %1491, %v1325_v44   ;;  %v1326_v59 = vmul.f32 %v1325_v44, %v1294_v43 }
 0x6e2   :  { %1328 = vrot.lane.b32.xlu0 %v1326_v59, %s1531_s30 }
 0x754   :  { %v1329_v61 = vpop.permute.xlu0 %1328 }
 0x755   :  { %v1331_v0 = vsub.f32 %v1322_v57, %v1329_v61 }
 0x757   :  { %1344 = vperm.xlu0 %1492, %v1331_v0  }
 0x75f   :  { %v1335_v2 = vpop.permute.xlu1 %1334 }
 0x760   :  { %v1337_v63 = vmul.f32 %v1335_v2, %v2016_v18  ;;  %v1338_v4 = vmul.f32 %v1335_v2, %v2019_v14  ;;  %v1339_v60 = vmul.f32 %v1335_v2, %v1177_v8  ;;  %v1340_v7 = vmul.f32 %v1335_v2, %v1179_v36 }
 0x761   :  { %v1341_v12 = vmul.f32 %v1335_v2, %v1248_v39 }
 0x7d6   :  { %v1345_v26 = vpop.permute.xlu0 %1344 }
 0x7d7   :  { %v1347_v29 = vadd.f32 %v1345_v26, %v1337_v63  ;;  %v1348_v32 = vadd.f32 %v1345_v26, %v1338_v4  ;;  %v1349_v1 = vadd.f32 %v1345_v26, %v1339_v60  ;;  %v1350_v33 = vadd.f32 %v1345_v26, %v1340_v7 }
 0x7d8   :  { %v1351_v6 = vadd.f32 %v1345_v26, %v1341_v12 }
 0x7d9   :  { %v1352_v34 = vmax.f32 %v1347_v29, 0.0  ;;  %v1353_v35 = vmax.f32 %v1348_v32, 0.0  ;;  %v1354_v21 = vmax.f32 %v1349_v1, 0.0  ;;  %v1355_v37 = vmax.f32 %v1350_v33, 0.0 }
 0x7da   :  { %v1356_v38 = vmax.f32 %v1351_v6, 0.0 }
 0x7db   :  { %v1361_v3 = vcombine.low %v1352_v34, %v1353_v35  ;;  %v1362_v15 = vcombine.low %v1354_v21, %v1355_v37 }
 0x7dc   :  { %1367 = vst.msk [vmem:[%s2062_s6 + $0x10] sm:$0xf] %vm36_vm0, %v1356_v38 }
 0x7dd   :  { %1365 = vst [vmem:[%s2062_s6] sm:$0xff] %v1361_v3  ;;  %1366 = vst [vmem:[%s2062_s6 + $0x8] sm:$0xff] %v1362_v15 }

</bundles_post_ra>
